<compile_context>
chip_gen: v5e
topology: v5e:2x2
jax: 0.10.0
libtpu: 0.0.40
codegen_flags: <defaults>
</compile_context>

<pallas_src>
import functools

import jax
import jax.numpy as jnp
from jax.experimental import pallas as pl
from jax.experimental.pallas import tpu as pltpu

BN_EPS = 1e-5
LANE = 128
MATMUL_DTYPE = jnp.bfloat16      # MXU operand dtype (f32 accumulation)
CONV_RAW_DTYPE = jnp.bfloat16    # dtype of intermediate conv outputs in HBM
_MAX_SINGLE_K = 2048             # above this, tile K in 512-wide slices
_K_TILE = 512

_VMEM_LIMIT = None


def _round_up(x, m):
    return (x + m - 1) // m * m


def _vmem_limit_bytes():
    """Per-generation scoped-VMEM limit (conservative fallback = v7x 64 MiB)."""
    global _VMEM_LIMIT
    if _VMEM_LIMIT is None:
        phys = 64 << 20
        try:
            info = pltpu.get_tpu_info()
            cap = getattr(info, "vmem_capacity_bytes", None)
            if cap:
                phys = int(cap)
        except Exception:
            pass
        _VMEM_LIMIT = int(min(phys * 3 // 4, 96 << 20))
    return _VMEM_LIMIT


def _choose_rows(m, per_row_bytes, fixed_bytes, budget_bytes, max_rows):
    """Largest multiple-of-8 row tile that fits the VMEM budget."""
    cap = max(8, min(int(max_rows), 2048, _round_up(max(m, 1), 8)))
    cap = (cap // 8) * 8
    avail = max(budget_bytes - fixed_bytes, 8 * per_row_bytes)
    fit = max(8, (int(avail // max(per_row_bytes, 1)) // 8) * 8)
    return max(8, min(cap, fit))


# ---------------------------------------------------------------------------
# Kernel 1: (M,K)-tiled conv-as-matmul + per-M-tile channel sum / sum-of-squares
# ---------------------------------------------------------------------------
def _matmul_stats_kernel(x_ref, w_ref, out_ref, sum_ref, sq_ref, *acc_scratch,
                         m_total, tm, num_k):
    prod = jnp.dot(x_ref[...], w_ref[...], preferred_element_type=jnp.float32)

    if num_k == 1:
        acc_final = prod
    else:
        acc_ref = acc_scratch[0]

        @pl.when(pl.program_id(1) == 0)
        def _zero():
            acc_ref[...] = jnp.zeros_like(acc_ref)

        acc_ref[...] += prod

    def _epilogue(acc):
        # Mask rows beyond the true M (ragged last tile reads undefined data).
        if m_total % tm != 0:
            row = (jax.lax.broadcasted_iota(jnp.int32, acc.shape, 0)
                   + pl.program_id(0) * tm)
            acc = jnp.where(row < m_total, acc, 0.0)
        out_ref[...] = acc.astype(out_ref.dtype)
        sum_ref[...] = jnp.sum(acc, axis=0, keepdims=True).reshape(1, 1, -1)
        sq_ref[...] = jnp.sum(acc * acc, axis=0, keepdims=True).reshape(1, 1, -1)

    if num_k == 1:
        _epilogue(acc_final)
    else:
        @pl.when(pl.program_id(1) == num_k - 1)
        def _final():
            _epilogue(acc_scratch[0][...])


def conv_matmul_stats(patches, w_mat, *, n_pad, max_rows, vmem_limit):
    m, k = patches.shape

    # --- K tiling (only kicks in for very wide im2col matrices) -------------
    if k <= _MAX_SINGLE_K:
        tk, k_pad = k, k
    else:
        tk = _K_TILE
        k_pad = _round_up(k, tk)
        patches = jnp.pad(patches, ((0, 0), (0, k_pad - k)))
        w_mat = jnp.pad(w_mat, ((0, k_pad - k), (0, 0)))
    num_k = k_pad // tk

    # --- M tiling under an explicit VMEM budget ------------------------------
    budget = int(vmem_limit * 0.6)
    per_row = (2 * tk * 2            # bf16 patches, double-buffered
               + 2 * n_pad * 2       # bf16 conv-out, double-buffered
               + (n_pad * 4 if num_k > 1 else 0))   # f32 scratch accumulator
    fixed = 2 * tk * n_pad * 2 + 4 * 2 * 2 * n_pad * 4
    tm = _choose_rows(m, per_row, fixed, budget, max_rows)
    num_m = pl.cdiv(m, tm)

    flops = 2 * m * k * n_pad + 3 * m * n_pad
    bytes_accessed = int(2 * (m * k_pad + k_pad * n_pad + m * n_pad)
                         + 8 * num_m * n_pad)

    kernel = functools.partial(
        _matmul_stats_kernel, m_total=m, tm=tm, num_k=num_k)
    scratch = [pltpu.VMEM((tm, n_pad), jnp.float32)] if num_k > 1 else []

    return pl.pallas_call(
        kernel,
        out_shape=(
            jax.ShapeDtypeStruct((m, n_pad), CONV_RAW_DTYPE),     # raw conv
            jax.ShapeDtypeStruct((num_m, 1, n_pad), jnp.float32),  # per-tile sum
            jax.ShapeDtypeStruct((num_m, 1, n_pad), jnp.float32),  # per-tile sumsq
        ),
        grid=(num_m, num_k),
        in_specs=[
            pl.BlockSpec((tm, tk), lambda i, kk: (i, kk)),
            pl.BlockSpec((tk, n_pad), lambda i, kk: (kk, 0)),
        ],
        out_specs=(
            pl.BlockSpec((tm, n_pad), lambda i, kk: (i, 0)),
            pl.BlockSpec((1, 1, n_pad), lambda i, kk: (i, 0, 0)),
            pl.BlockSpec((1, 1, n_pad), lambda i, kk: (i, 0, 0)),
        ),
        scratch_shapes=scratch,
        compiler_params=pltpu.CompilerParams(
            dimension_semantics=("parallel", "arbitrary"),
            vmem_limit_bytes=vmem_limit),
        cost_estimate=pl.CostEstimate(
            flops=flops, transcendentals=0, bytes_accessed=bytes_accessed),
    )(patches, w_mat)


# ---------------------------------------------------------------------------
# Kernel 2: row-tiled BN affine (+ shortcut: none / identity / affine) (+ ReLU)
# ---------------------------------------------------------------------------
def _bn_apply_kernel(*refs, apply_relu, res_mode):
    if res_mode == 2:
        x_ref, s_ref, b_ref, r_ref, rs_ref, rb_ref, o_ref = refs
    elif res_mode == 1:
        x_ref, s_ref, b_ref, r_ref, o_ref = refs
    else:
        x_ref, s_ref, b_ref, o_ref = refs

    out = x_ref[...].astype(jnp.float32) * s_ref[...] + b_ref[...]
    if res_mode == 2:
        out = out + (r_ref[...].astype(jnp.float32) * rs_ref[...] + rb_ref[...])
    elif res_mode == 1:
        out = out + r_ref[...].astype(jnp.float32)
    if apply_relu:
        out = jnp.maximum(out, 0.0)
    o_ref[...] = out.astype(o_ref.dtype)


def bn_apply(conv_raw, scale, shift, *, n_pad, residual=None, res_scale=None,
             res_shift=None, apply_relu=True, out_dtype=jnp.float32,
             max_rows=2048, vmem_limit=None):
    m = conv_raw.shape[0]
    res_mode = 0 if residual is None else (2 if res_scale is not None else 1)
    out_isz = jnp.dtype(out_dtype).itemsize

    budget = int(vmem_limit * 0.6)
    per_row = 2 * n_pad * conv_raw.dtype.itemsize + 2 * n_pad * out_isz
    if res_mode:
        per_row += 2 * n_pad * residual.dtype.itemsize
    tr = _choose_rows(m, per_row, 6 * n_pad * 4, budget, max_rows)
    num_r = pl.cdiv(m, tr)

    inputs = [conv_raw, scale.reshape(1, n_pad), shift.reshape(1, n_pad)]
    in_specs = [
        pl.BlockSpec((tr, n_pad), lambda i: (i, 0)),
        pl.BlockSpec((1, n_pad), lambda i: (0, 0)),
        pl.BlockSpec((1, n_pad), lambda i: (0, 0)),
    ]
    if res_mode:
        inputs.append(residual)
        in_specs.append(pl.BlockSpec((tr, n_pad), lambda i: (i, 0)))
    if res_mode == 2:
        inputs += [res_scale.reshape(1, n_pad), res_shift.reshape(1, n_pad)]
        in_specs += [pl.BlockSpec((1, n_pad), lambda i: (0, 0)),
                     pl.BlockSpec((1, n_pad), lambda i: (0, 0))]

    kernel = functools.partial(
        _bn_apply_kernel, apply_relu=apply_relu, res_mode=res_mode)

    nbytes = m * n_pad * (conv_raw.dtype.itemsize + out_isz)
    if res_mode:
        nbytes += m * n_pad * residual.dtype.itemsize

    return pl.pallas_call(
        kernel,
        out_shape=jax.ShapeDtypeStruct((m, n_pad), out_dtype),
        grid=(num_r,),
        in_specs=in_specs,
        out_specs=pl.BlockSpec((tr, n_pad), lambda i: (i, 0)),
        compiler_params=pltpu.CompilerParams(
            dimension_semantics=("parallel",),
            vmem_limit_bytes=vmem_limit),
        cost_estimate=pl.CostEstimate(
            flops=(6 if res_mode == 2 else 4) * m * n_pad,
            transcendentals=0, bytes_accessed=int(nbytes)),
    )(*inputs)


# ---------------------------------------------------------------------------
# Glue (plain JAX, no heavy compute)
# ---------------------------------------------------------------------------
def im2col(x_nhwc, ksize, stride, pad):
    B, H, W, C = x_nhwc.shape
    xp = jnp.pad(x_nhwc, ((0, 0), (pad, pad), (pad, pad), (0, 0)))
    Ho = (H + 2 * pad - ksize) // stride + 1
    Wo = (W + 2 * pad - ksize) // stride + 1
    cols = []
    for kh in range(ksize):
        for kw in range(ksize):
            cols.append(
                xp[:, kh:kh + stride * Ho:stride, kw:kw + stride * Wo:stride, :])
    patches = jnp.concatenate(cols, axis=-1)          # (B, Ho, Wo, k*k*C)
    return patches.reshape(B * Ho * Wo, ksize * ksize * C), (B, Ho, Wo)


def conv_weight_to_mat(w, n_pad):
    # PyTorch (O, I, KH, KW) -> (KH*KW*I, O) matching im2col column order,
    # zero-padded along output channels up to n_pad (lane-dense N), bf16.
    O, I, KH, KW = w.shape
    m = jnp.transpose(w, (2, 3, 1, 0)).reshape(KH * KW * I, O)
    if O != n_pad:
        m = jnp.pad(m, ((0, 0), (0, n_pad - O)))
    return m.astype(MATMUL_DTYPE)


def _pad1d(v, n):
    v = v.astype(jnp.float32)
    return v if v.shape[0] == n else jnp.pad(v, (0, n - v.shape[0]))


def _pad_cols(a, cols):
    if a.shape[1] == cols:
        return a
    return jnp.pad(a, ((0, 0), (0, cols - a.shape[1])))


def _bn_affine(sum_parts, sq_parts, gamma_pad, beta_pad, m_true):
    """Fold batch statistics (f32 partial sums per M tile) into scale/shift."""
    s = jnp.sum(sum_parts.reshape(-1, sum_parts.shape[-1]), axis=0)
    q = jnp.sum(sq_parts.reshape(-1, sq_parts.shape[-1]), axis=0)
    mean = s / m_true
    var = jnp.maximum(q / m_true - mean * mean, 0.0)   # biased variance
    scale = gamma_pad * jax.lax.rsqrt(var + BN_EPS)
    shift = beta_pad - mean * scale
    return scale, shift


# ---------------------------------------------------------------------------
# BasicBlock forward (NCHW in / NCHW out, training-mode BatchNorm like PyTorch)
# ---------------------------------------------------------------------------
def basic_block_forward(x_nchw, params, stride, max_matmul_rows=1024,
                        max_apply_rows=2048):
    vmem_limit = _vmem_limit_bytes()
    x = jnp.transpose(x_nchw, (0, 2, 3, 1)).astype(MATMUL_DTYPE)   # NHWC bf16
    B, H, W, Cin = x.shape
    planes = params["conv1_w"].shape[0]
    n_pad = _round_up(planes, LANE)

    # ---- conv1 -> bn1 -> relu ------------------------------------------------
    p1, (B1, Ho, Wo) = im2col(x, 3, stride, 1)
    M = B1 * Ho * Wo
    w1 = conv_weight_to_mat(params["conv1_w"], n_pad)
    conv1_raw, s1, q1 = conv_matmul_stats(
        p1, w1, n_pad=n_pad, max_rows=max_matmul_rows, vmem_limit=vmem_limit)
    sc1, sh1 = _bn_affine(s1, q1, _pad1d(params["bn1_gamma"], n_pad),
                          _pad1d(params["bn1_beta"], n_pad), M)
    out1 = bn_apply(conv1_raw, sc1, sh1, n_pad=n_pad, apply_relu=True,
                    out_dtype=MATMUL_DTYPE, max_rows=max_apply_rows,
                    vmem_limit=vmem_limit)
    out1_nhwc = out1[:, :planes].reshape(B1, Ho, Wo, planes)

    # ---- shortcut --------------------------------------------------------------
    if stride != 1 or Cin != planes:
        # Projection: raw 1x1 conv + its folded BN affine (applied in kernel 2).
        xs = x[:, ::stride, ::stride, :].reshape(M, Cin)
        wsc = conv_weight_to_mat(params["sc_w"], n_pad)
        sc_raw, ss, sq = conv_matmul_stats(
            xs, wsc, n_pad=n_pad, max_rows=max_matmul_rows, vmem_limit=vmem_limit)
        sc_scale, sc_shift = _bn_affine(ss, sq, _pad1d(params["sc_gamma"], n_pad),
                                        _pad1d(params["sc_beta"], n_pad), M)
    else:
        # Identity: raw bf16 residual, no affine applied in the kernel.
        sc_raw = _pad_cols(x.reshape(M, Cin), n_pad)
        sc_scale = None
        sc_shift = None

    # ---- conv2 -> bn2 -> (+shortcut) -> relu -----------------------------------
    p2, _ = im2col(out1_nhwc, 3, 1, 1)
    w2 = conv_weight_to_mat(params["conv2_w"], n_pad)
    conv2_raw, s2, q2 = conv_matmul_stats(
        p2, w2, n_pad=n_pad, max_rows=max_matmul_rows, vmem_limit=vmem_limit)
    sc2, sh2 = _bn_affine(s2, q2, _pad1d(params["bn2_gamma"], n_pad),
                          _pad1d(params["bn2_beta"], n_pad), M)
    out2 = bn_apply(conv2_raw, sc2, sh2, n_pad=n_pad,
                    residual=sc_raw, res_scale=sc_scale, res_shift=sc_shift,
                    apply_relu=True, out_dtype=jnp.float32,
                    max_rows=max_apply_rows, vmem_limit=vmem_limit)

    out_nhwc = out2[:, :planes].reshape(B1, Ho, Wo, planes)
    return jnp.transpose(out_nhwc, (0, 3, 1, 2)).astype(x_nchw.dtype)


# ---------------------------------------------------------------------------
# Pure-JAX f32 reference (correctness check only)
# ---------------------------------------------------------------------------
def ref_forward(x_nchw, params, stride):
    def conv(x, w, s):
        pad = w.shape[2] // 2
        return jax.lax.conv_general_dilated(
            x, w, window_strides=(s, s), padding=[(pad, pad), (pad, pad)],
            dimension_numbers=("NCHW", "OIHW", "NCHW"))

    def bn(x, gamma, beta):
        mean = jnp.mean(x, axis=(0, 2, 3), keepdims=True)
        var = jnp.mean(jnp.square(x - mean), axis=(0, 2, 3), keepdims=True)
        return (x - mean) * jax.lax.rsqrt(var + BN_EPS) * gamma.reshape(
            1, -1, 1, 1) + beta.reshape(1, -1, 1, 1)

    out = jax.nn.relu(bn(conv(x_nchw, params["conv1_w"], stride),
                         params["bn1_gamma"], params["bn1_beta"]))
    out = bn(conv(out, params["conv2_w"], 1),
             params["bn2_gamma"], params["bn2_beta"])
    Cin, planes = x_nchw.shape[1], params["conv1_w"].shape[0]
    if stride != 1 or Cin != planes:
        sc = bn(conv(x_nchw, params["sc_w"], stride),
                params["sc_gamma"], params["sc_beta"])
    else:
        sc = x_nchw
    return jax.nn.relu(out + sc)


if __name__ == "__main__":
    key = jax.random.PRNGKey(0)

    def make_params(k, in_planes, planes, with_proj):
        ks = jax.random.split(k, 9)
        p = {
            "conv1_w": 0.1 * jax.random.normal(ks[0], (planes, in_planes, 3, 3), jnp.float32),
            "bn1_gamma": 1.0 + 0.1 * jax.random.normal(ks[1], (planes,), jnp.float32),
            "bn1_beta": 0.1 * jax.random.normal(ks[2], (planes,), jnp.float32),
            "conv2_w": 0.1 * jax.random.normal(ks[3], (planes, planes, 3, 3), jnp.float32),
            "bn2_gamma": 1.0 + 0.1 * jax.random.normal(ks[4], (planes,), jnp.float32),
            "bn2_beta": 0.1 * jax.random.normal(ks[5], (planes,), jnp.float32),
        }
        if with_proj:
            p.update({
                "sc_w": 0.1 * jax.random.normal(ks[6], (planes, in_planes, 1, 1), jnp.float32),
                "sc_gamma": 1.0 + 0.1 * jax.random.normal(ks[7], (planes,), jnp.float32),
                "sc_beta": 0.1 * jax.random.normal(ks[8], (planes,), jnp.float32),
            })
        return p

    k1, k2, k3, k4 = jax.random.split(key, 4)

    # Case 1: projection shortcut (stride=2, channel change) — the spec's shapes.
    x1 = jax.random.normal(k1, (2, 4, 16, 16), jnp.float32)
    prm1 = make_params(k2, 4, 8, True)
    fwd1 = jax.jit(lambda x, p: basic_block_forward(x, p, stride=2))
    out1 = jax.block_until_ready(fwd1(x1, prm1))
    ref1 = jax.block_until_ready(ref_forward(x1, prm1, 2))
    assert out1.shape == (2, 8, 8, 8), out1.shape
    assert jnp.allclose(out1, ref1, atol=0.15, rtol=0.1), float(
        jnp.max(jnp.abs(out1 - ref1)))

    # Case 2: identity shortcut with non-tile-aligned M (exercises multi-tile
    # partial stats, the in-kernel ragged-row masking and decoupled apply tiles).
    x2 = jax.random.normal(k3, (2, 8, 14, 14), jnp.float32)
    prm2 = make_params(k4, 8, 8, False)
    fwd2 = jax.jit(lambda x, p: basic_block_forward(
        x, p, stride=1, max_matmul_rows=64, max_apply_rows=64))
    out2 = jax.block_until_ready(fwd2(x2, prm2))
    ref2 = jax.block_until_ready(ref_forward(x2, prm2, 1))
    assert out2.shape == (2, 8, 14, 14), out2.shape
    assert jnp.allclose(out2, ref2, atol=0.15, rtol=0.1), float(
        jnp.max(jnp.abs(out2 - ref2)))

    print("KERNEL_OK")
</pallas_src>

<mosaic_0001>
module attributes {stable_mosaic.version = 11 : i64} {
  func.func @_matmul_stats_kernel(%arg0: i32, %arg1: i32, %arg2: memref<128x36xbf16, #tpu.memory_space<vmem>>, %arg3: memref<36x128xbf16, #tpu.memory_space<vmem>>, %arg4: memref<128x128xbf16, #tpu.memory_space<vmem>>, %arg5: memref<1x1x128xf32, #tpu.memory_space<vmem>>, %arg6: memref<1x1x128xf32, #tpu.memory_space<vmem>>) attributes {dimension_semantics = [#tpu.dimension_semantics<parallel>, #tpu.dimension_semantics<arbitrary>], iteration_bounds = array<i64: 1, 1>, scalar_prefetch = 0 : i64, scratch_operands = 0 : i64, tpu.core_type = #tpu.core_type<tc>, window_params = [{transform_indices = @transform_0, window_bounds = array<i64: 128, 36>}, {transform_indices = @transform_1, window_bounds = array<i64: 36, 128>}, {transform_indices = @transform_2, window_bounds = array<i64: 128, 128>}, {transform_indices = @transform_3, window_bounds = array<i64: 1, 1, 128>}, {transform_indices = @transform_4, window_bounds = array<i64: 1, 1, 128>}]} {
    %c0 = arith.constant 0 : index
    %c0_0 = arith.constant 0 : index
    %0 = vector.load %arg2[%c0, %c0_0] : memref<128x36xbf16, #tpu.memory_space<vmem>>, vector<128x36xbf16>
    %c0_1 = arith.constant 0 : index
    %c0_2 = arith.constant 0 : index
    %1 = vector.load %arg3[%c0_1, %c0_2] : memref<36x128xbf16, #tpu.memory_space<vmem>>, vector<36x128xbf16>
    %cst = arith.constant dense<0.000000e+00> : vector<128x128xf32>
    %2 = tpu.matmul %0, %1, %cst {dimension_numbers = #tpu.dot_dimension_numbers<[1], [0], [0], [1], [0, 0, 1, 1], [], []>} : vector<128x36xbf16>, vector<36x128xbf16>, vector<128x128xf32> -> vector<128x128xf32>
    %3 = arith.truncf %2 : vector<128x128xf32> to vector<128x128xbf16>
    %c0_3 = arith.constant 0 : index
    %c0_4 = arith.constant 0 : index
    %4 = vector.load %arg4[%c0_3, %c0_4] : memref<128x128xbf16, #tpu.memory_space<vmem>>, vector<128x128xbf16>
    tpu.vector_store %arg4[%c0_3, %c0_4], %3 {strides = array<i32>} : memref<128x128xbf16, #tpu.memory_space<vmem>>, vector<128x128xbf16>,
    %cst_5 = arith.constant dense<0.000000e+00> : vector<128xf32>
    %5 = vector.multi_reduction <add>, %2, %cst_5 [0] : vector<128x128xf32> to vector<128xf32>
    %6 = vector.shape_cast %5 : vector<128xf32> to vector<1x128xf32>
    %7 = vector.shape_cast %6 : vector<1x128xf32> to vector<1x1x128xf32>
    %c0_6 = arith.constant 0 : index
    %c0_7 = arith.constant 0 : index
    %c0_8 = arith.constant 0 : index
    %8 = vector.load %arg5[%c0_6, %c0_7, %c0_8] : memref<1x1x128xf32, #tpu.memory_space<vmem>>, vector<1x1x128xf32>
    tpu.vector_store %arg5[%c0_6, %c0_7, %c0_8], %7 {strides = array<i32>} : memref<1x1x128xf32, #tpu.memory_space<vmem>>, vector<1x1x128xf32>,
    %9 = arith.mulf %2, %2 : vector<128x128xf32>
    %cst_9 = arith.constant dense<0.000000e+00> : vector<128xf32>
    %10 = vector.multi_reduction <add>, %9, %cst_9 [0] : vector<128x128xf32> to vector<128xf32>
    %11 = vector.shape_cast %10 : vector<128xf32> to vector<1x128xf32>
    %12 = vector.shape_cast %11 : vector<1x128xf32> to vector<1x1x128xf32>
    %c0_10 = arith.constant 0 : index
    %c0_11 = arith.constant 0 : index
    %c0_12 = arith.constant 0 : index
    %13 = vector.load %arg6[%c0_10, %c0_11, %c0_12] : memref<1x1x128xf32, #tpu.memory_space<vmem>>, vector<1x1x128xf32>
    tpu.vector_store %arg6[%c0_10, %c0_11, %c0_12], %12 {strides = array<i32>} : memref<1x1x128xf32, #tpu.memory_space<vmem>>, vector<1x1x128xf32>,
    return
  }
  func.func @transform_0(%arg0: i32, %arg1: i32) -> (i32, i32) {
    %c0_i32 = arith.constant 0 : i32
    return %arg0, %arg1 : i32, i32
  }
  func.func @transform_1(%arg0: i32, %arg1: i32) -> (i32, i32) {
    %c0_i32 = arith.constant 0 : i32
    %c0_i32_0 = arith.constant 0 : i32
    return %arg1, %c0_i32 : i32, i32
  }
  func.func @transform_2(%arg0: i32, %arg1: i32) -> (i32, i32) {
    %c0_i32 = arith.constant 0 : i32
    %c0_i32_0 = arith.constant 0 : i32
    return %arg0, %c0_i32 : i32, i32
  }
  func.func @transform_3(%arg0: i32, %arg1: i32) -> (i32, i32, i32) {
    %c0_i32 = arith.constant 0 : i32
    %c0_i32_0 = arith.constant 0 : i32
    %c0_i32_1 = arith.constant 0 : i32
    return %arg0, %c0_i32, %c0_i32_0 : i32, i32, i32
  }
  func.func @transform_4(%arg0: i32, %arg1: i32) -> (i32, i32, i32) {
    %c0_i32 = arith.constant 0 : i32
    %c0_i32_0 = arith.constant 0 : i32
    %c0_i32_1 = arith.constant 0 : i32
    return %arg0, %c0_i32, %c0_i32_0 : i32, i32, i32
  }
}

module attributes {stable_mosaic.version = 11 : i64} {
  func.func @_bn_apply_kernel(%arg0: i32, %arg1: memref<128x128xbf16, #tpu.memory_space<vmem>>, %arg2: memref<1x128xf32, #tpu.memory_space<vmem>>, %arg3: memref<1x128xf32, #tpu.memory_space<vmem>>, %arg4: memref<128x128xbf16, #tpu.memory_space<vmem>>) attributes {dimension_semantics = [#tpu.dimension_semantics<parallel>], iteration_bounds = array<i64: 1>, scalar_prefetch = 0 : i64, scratch_operands = 0 : i64, tpu.core_type = #tpu.core_type<tc>, window_params = [{transform_indices = @transform_0, window_bounds = array<i64: 128, 128>}, {pipeline_mode = #tpu.pipeline_mode<synchronous>, transform_indices = @transform_1, window_bounds = array<i64: 1, 128>}, {pipeline_mode = #tpu.pipeline_mode<synchronous>, transform_indices = @transform_2, window_bounds = array<i64: 1, 128>}, {transform_indices = @transform_3, window_bounds = array<i64: 128, 128>}]} {
    %c0 = arith.constant 0 : index
    %c0_0 = arith.constant 0 : index
    %0 = vector.load %arg1[%c0, %c0_0] : memref<128x128xbf16, #tpu.memory_space<vmem>>, vector<128x128xbf16>
    %1 = arith.extf %0 : vector<128x128xbf16> to vector<128x128xf32>
    %c0_1 = arith.constant 0 : index
    %c0_2 = arith.constant 0 : index
    %2 = vector.load %arg2[%c0_1, %c0_2] : memref<1x128xf32, #tpu.memory_space<vmem>>, vector<1x128xf32>
    %3 = vector.broadcast %2 : vector<1x128xf32> to vector<128x128xf32>
    %4 = arith.mulf %1, %3 : vector<128x128xf32>
    %c0_3 = arith.constant 0 : index
    %c0_4 = arith.constant 0 : index
    %5 = vector.load %arg3[%c0_3, %c0_4] : memref<1x128xf32, #tpu.memory_space<vmem>>, vector<1x128xf32>
    %6 = vector.broadcast %5 : vector<1x128xf32> to vector<128x128xf32>
    %7 = arith.addf %4, %6 : vector<128x128xf32>
    %cst = arith.constant 0.000000e+00 : f32
    %8 = vector.broadcast %cst : f32 to vector<128x128xf32>
    %9 = arith.maximumf %7, %8 : vector<128x128xf32>
    %10 = arith.truncf %9 : vector<128x128xf32> to vector<128x128xbf16>
    %c0_5 = arith.constant 0 : index
    %c0_6 = arith.constant 0 : index
    %11 = vector.load %arg4[%c0_5, %c0_6] : memref<128x128xbf16, #tpu.memory_space<vmem>>, vector<128x128xbf16>
    tpu.vector_store %arg4[%c0_5, %c0_6], %10 {strides = array<i32>} : memref<128x128xbf16, #tpu.memory_space<vmem>>, vector<128x128xbf16>,
    return
  }
  func.func @transform_0(%arg0: i32) -> (i32, i32) {
    %c0_i32 = arith.constant 0 : i32
    %c0_i32_0 = arith.constant 0 : i32
    return %arg0, %c0_i32 : i32, i32
  }
  func.func @transform_1(%arg0: i32) -> (i32, i32) {
    %c0_i32 = arith.constant 0 : i32
    %c0_i32_0 = arith.constant 0 : i32
    %c0_i32_1 = arith.constant 0 : i32
    return %c0_i32, %c0_i32_0 : i32, i32
  }
  func.func @transform_2(%arg0: i32) -> (i32, i32) {
    %c0_i32 = arith.constant 0 : i32
    %c0_i32_0 = arith.constant 0 : i32
    %c0_i32_1 = arith.constant 0 : i32
    return %c0_i32, %c0_i32_0 : i32, i32
  }
  func.func @transform_3(%arg0: i32) -> (i32, i32) {
    %c0_i32 = arith.constant 0 : i32
    %c0_i32_0 = arith.constant 0 : i32
    return %arg0, %c0_i32 : i32, i32
  }
}

module attributes {stable_mosaic.version = 11 : i64} {
  func.func @_matmul_stats_kernel(%arg0: i32, %arg1: i32, %arg2: memref<128x72xbf16, #tpu.memory_space<vmem>>, %arg3: memref<72x128xbf16, #tpu.memory_space<vmem>>, %arg4: memref<128x128xbf16, #tpu.memory_space<vmem>>, %arg5: memref<1x1x128xf32, #tpu.memory_space<vmem>>, %arg6: memref<1x1x128xf32, #tpu.memory_space<vmem>>) attributes {dimension_semantics = [#tpu.dimension_semantics<parallel>, #tpu.dimension_semantics<arbitrary>], iteration_bounds = array<i64: 1, 1>, scalar_prefetch = 0 : i64, scratch_operands = 0 : i64, tpu.core_type = #tpu.core_type<tc>, window_params = [{transform_indices = @transform_0, window_bounds = array<i64: 128, 72>}, {transform_indices = @transform_1, window_bounds = array<i64: 72, 128>}, {transform_indices = @transform_2, window_bounds = array<i64: 128, 128>}, {transform_indices = @transform_3, window_bounds = array<i64: 1, 1, 128>}, {transform_indices = @transform_4, window_bounds = array<i64: 1, 1, 128>}]} {
    %c0 = arith.constant 0 : index
    %c0_0 = arith.constant 0 : index
    %0 = vector.load %arg2[%c0, %c0_0] : memref<128x72xbf16, #tpu.memory_space<vmem>>, vector<128x72xbf16>
    %c0_1 = arith.constant 0 : index
    %c0_2 = arith.constant 0 : index
    %1 = vector.load %arg3[%c0_1, %c0_2] : memref<72x128xbf16, #tpu.memory_space<vmem>>, vector<72x128xbf16>
    %cst = arith.constant dense<0.000000e+00> : vector<128x128xf32>
    %2 = tpu.matmul %0, %1, %cst {dimension_numbers = #tpu.dot_dimension_numbers<[1], [0], [0], [1], [0, 0, 1, 1], [], []>} : vector<128x72xbf16>, vector<72x128xbf16>, vector<128x128xf32> -> vector<128x128xf32>
    %3 = arith.truncf %2 : vector<128x128xf32> to vector<128x128xbf16>
    %c0_3 = arith.constant 0 : index
    %c0_4 = arith.constant 0 : index
    %4 = vector.load %arg4[%c0_3, %c0_4] : memref<128x128xbf16, #tpu.memory_space<vmem>>, vector<128x128xbf16>
    tpu.vector_store %arg4[%c0_3, %c0_4], %3 {strides = array<i32>} : memref<128x128xbf16, #tpu.memory_space<vmem>>, vector<128x128xbf16>,
    %cst_5 = arith.constant dense<0.000000e+00> : vector<128xf32>
    %5 = vector.multi_reduction <add>, %2, %cst_5 [0] : vector<128x128xf32> to vector<128xf32>
    %6 = vector.shape_cast %5 : vector<128xf32> to vector<1x128xf32>
    %7 = vector.shape_cast %6 : vector<1x128xf32> to vector<1x1x128xf32>
    %c0_6 = arith.constant 0 : index
    %c0_7 = arith.constant 0 : index
    %c0_8 = arith.constant 0 : index
    %8 = vector.load %arg5[%c0_6, %c0_7, %c0_8] : memref<1x1x128xf32, #tpu.memory_space<vmem>>, vector<1x1x128xf32>
    tpu.vector_store %arg5[%c0_6, %c0_7, %c0_8], %7 {strides = array<i32>} : memref<1x1x128xf32, #tpu.memory_space<vmem>>, vector<1x1x128xf32>,
    %9 = arith.mulf %2, %2 : vector<128x128xf32>
    %cst_9 = arith.constant dense<0.000000e+00> : vector<128xf32>
    %10 = vector.multi_reduction <add>, %9, %cst_9 [0] : vector<128x128xf32> to vector<128xf32>
    %11 = vector.shape_cast %10 : vector<128xf32> to vector<1x128xf32>
    %12 = vector.shape_cast %11 : vector<1x128xf32> to vector<1x1x128xf32>
    %c0_10 = arith.constant 0 : index
    %c0_11 = arith.constant 0 : index
    %c0_12 = arith.constant 0 : index
    %13 = vector.load %arg6[%c0_10, %c0_11, %c0_12] : memref<1x1x128xf32, #tpu.memory_space<vmem>>, vector<1x1x128xf32>
    tpu.vector_store %arg6[%c0_10, %c0_11, %c0_12], %12 {strides = array<i32>} : memref<1x1x128xf32, #tpu.memory_space<vmem>>, vector<1x1x128xf32>,
    return
  }
  func.func @transform_0(%arg0: i32, %arg1: i32) -> (i32, i32) {
    %c0_i32 = arith.constant 0 : i32
    return %arg0, %arg1 : i32, i32
  }
  func.func @transform_1(%arg0: i32, %arg1: i32) -> (i32, i32) {
    %c0_i32 = arith.constant 0 : i32
    %c0_i32_0 = arith.constant 0 : i32
    return %arg1, %c0_i32 : i32, i32
  }
  func.func @transform_2(%arg0: i32, %arg1: i32) -> (i32, i32) {
    %c0_i32 = arith.constant 0 : i32
    %c0_i32_0 = arith.constant 0 : i32
    return %arg0, %c0_i32 : i32, i32
  }
  func.func @transform_3(%arg0: i32, %arg1: i32) -> (i32, i32, i32) {
    %c0_i32 = arith.constant 0 : i32
    %c0_i32_0 = arith.constant 0 : i32
    %c0_i32_1 = arith.constant 0 : i32
    return %arg0, %c0_i32, %c0_i32_0 : i32, i32, i32
  }
  func.func @transform_4(%arg0: i32, %arg1: i32) -> (i32, i32, i32) {
    %c0_i32 = arith.constant 0 : i32
    %c0_i32_0 = arith.constant 0 : i32
    %c0_i32_1 = arith.constant 0 : i32
    return %arg0, %c0_i32, %c0_i32_0 : i32, i32, i32
  }
}

module attributes {stable_mosaic.version = 11 : i64} {
  func.func @_matmul_stats_kernel(%arg0: i32, %arg1: i32, %arg2: memref<128x4xbf16, #tpu.memory_space<vmem>>, %arg3: memref<4x128xbf16, #tpu.memory_space<vmem>>, %arg4: memref<128x128xbf16, #tpu.memory_space<vmem>>, %arg5: memref<1x1x128xf32, #tpu.memory_space<vmem>>, %arg6: memref<1x1x128xf32, #tpu.memory_space<vmem>>) attributes {dimension_semantics = [#tpu.dimension_semantics<parallel>, #tpu.dimension_semantics<arbitrary>], iteration_bounds = array<i64: 1, 1>, scalar_prefetch = 0 : i64, scratch_operands = 0 : i64, tpu.core_type = #tpu.core_type<tc>, window_params = [{transform_indices = @transform_0, window_bounds = array<i64: 128, 4>}, {transform_indices = @transform_1, window_bounds = array<i64: 4, 128>}, {transform_indices = @transform_2, window_bounds = array<i64: 128, 128>}, {transform_indices = @transform_3, window_bounds = array<i64: 1, 1, 128>}, {transform_indices = @transform_4, window_bounds = array<i64: 1, 1, 128>}]} {
    %c0 = arith.constant 0 : index
    %c0_0 = arith.constant 0 : index
    %0 = vector.load %arg2[%c0, %c0_0] : memref<128x4xbf16, #tpu.memory_space<vmem>>, vector<128x4xbf16>
    %c0_1 = arith.constant 0 : index
    %c0_2 = arith.constant 0 : index
    %1 = vector.load %arg3[%c0_1, %c0_2] : memref<4x128xbf16, #tpu.memory_space<vmem>>, vector<4x128xbf16>
    %cst = arith.constant dense<0.000000e+00> : vector<128x128xf32>
    %2 = tpu.matmul %0, %1, %cst {dimension_numbers = #tpu.dot_dimension_numbers<[1], [0], [0], [1], [0, 0, 1, 1], [], []>} : vector<128x4xbf16>, vector<4x128xbf16>, vector<128x128xf32> -> vector<128x128xf32>
    %3 = arith.truncf %2 : vector<128x128xf32> to vector<128x128xbf16>
    %c0_3 = arith.constant 0 : index
    %c0_4 = arith.constant 0 : index
    %4 = vector.load %arg4[%c0_3, %c0_4] : memref<128x128xbf16, #tpu.memory_space<vmem>>, vector<128x128xbf16>
    tpu.vector_store %arg4[%c0_3, %c0_4], %3 {strides = array<i32>} : memref<128x128xbf16, #tpu.memory_space<vmem>>, vector<128x128xbf16>,
    %cst_5 = arith.constant dense<0.000000e+00> : vector<128xf32>
    %5 = vector.multi_reduction <add>, %2, %cst_5 [0] : vector<128x128xf32> to vector<128xf32>
    %6 = vector.shape_cast %5 : vector<128xf32> to vector<1x128xf32>
    %7 = vector.shape_cast %6 : vector<1x128xf32> to vector<1x1x128xf32>
    %c0_6 = arith.constant 0 : index
    %c0_7 = arith.constant 0 : index
    %c0_8 = arith.constant 0 : index
    %8 = vector.load %arg5[%c0_6, %c0_7, %c0_8] : memref<1x1x128xf32, #tpu.memory_space<vmem>>, vector<1x1x128xf32>
    tpu.vector_store %arg5[%c0_6, %c0_7, %c0_8], %7 {strides = array<i32>} : memref<1x1x128xf32, #tpu.memory_space<vmem>>, vector<1x1x128xf32>,
    %9 = arith.mulf %2, %2 : vector<128x128xf32>
    %cst_9 = arith.constant dense<0.000000e+00> : vector<128xf32>
    %10 = vector.multi_reduction <add>, %9, %cst_9 [0] : vector<128x128xf32> to vector<128xf32>
    %11 = vector.shape_cast %10 : vector<128xf32> to vector<1x128xf32>
    %12 = vector.shape_cast %11 : vector<1x128xf32> to vector<1x1x128xf32>
    %c0_10 = arith.constant 0 : index
    %c0_11 = arith.constant 0 : index
    %c0_12 = arith.constant 0 : index
    %13 = vector.load %arg6[%c0_10, %c0_11, %c0_12] : memref<1x1x128xf32, #tpu.memory_space<vmem>>, vector<1x1x128xf32>
    tpu.vector_store %arg6[%c0_10, %c0_11, %c0_12], %12 {strides = array<i32>} : memref<1x1x128xf32, #tpu.memory_space<vmem>>, vector<1x1x128xf32>,
    return
  }
  func.func @transform_0(%arg0: i32, %arg1: i32) -> (i32, i32) {
    %c0_i32 = arith.constant 0 : i32
    return %arg0, %arg1 : i32, i32
  }
  func.func @transform_1(%arg0: i32, %arg1: i32) -> (i32, i32) {
    %c0_i32 = arith.constant 0 : i32
    %c0_i32_0 = arith.constant 0 : i32
    return %arg1, %c0_i32 : i32, i32
  }
  func.func @transform_2(%arg0: i32, %arg1: i32) -> (i32, i32) {
    %c0_i32 = arith.constant 0 : i32
    %c0_i32_0 = arith.constant 0 : i32
    return %arg0, %c0_i32 : i32, i32
  }
  func.func @transform_3(%arg0: i32, %arg1: i32) -> (i32, i32, i32) {
    %c0_i32 = arith.constant 0 : i32
    %c0_i32_0 = arith.constant 0 : i32
    %c0_i32_1 = arith.constant 0 : i32
    return %arg0, %c0_i32, %c0_i32_0 : i32, i32, i32
  }
  func.func @transform_4(%arg0: i32, %arg1: i32) -> (i32, i32, i32) {
    %c0_i32 = arith.constant 0 : i32
    %c0_i32_0 = arith.constant 0 : i32
    %c0_i32_1 = arith.constant 0 : i32
    return %arg0, %c0_i32, %c0_i32_0 : i32, i32, i32
  }
}

module attributes {stable_mosaic.version = 11 : i64} {
  func.func @_bn_apply_kernel(%arg0: i32, %arg1: memref<128x128xbf16, #tpu.memory_space<vmem>>, %arg2: memref<1x128xf32, #tpu.memory_space<vmem>>, %arg3: memref<1x128xf32, #tpu.memory_space<vmem>>, %arg4: memref<128x128xbf16, #tpu.memory_space<vmem>>, %arg5: memref<1x128xf32, #tpu.memory_space<vmem>>, %arg6: memref<1x128xf32, #tpu.memory_space<vmem>>, %arg7: memref<128x128xf32, #tpu.memory_space<vmem>>) attributes {dimension_semantics = [#tpu.dimension_semantics<parallel>], iteration_bounds = array<i64: 1>, scalar_prefetch = 0 : i64, scratch_operands = 0 : i64, tpu.core_type = #tpu.core_type<tc>, window_params = [{transform_indices = @transform_0, window_bounds = array<i64: 128, 128>}, {pipeline_mode = #tpu.pipeline_mode<synchronous>, transform_indices = @transform_1, window_bounds = array<i64: 1, 128>}, {pipeline_mode = #tpu.pipeline_mode<synchronous>, transform_indices = @transform_2, window_bounds = array<i64: 1, 128>}, {transform_indices = @transform_3, window_bounds = array<i64: 128, 128>}, {pipeline_mode = #tpu.pipeline_mode<synchronous>, transform_indices = @transform_4, window_bounds = array<i64: 1, 128>}, {pipeline_mode = #tpu.pipeline_mode<synchronous>, transform_indices = @transform_5, window_bounds = array<i64: 1, 128>}, {transform_indices = @transform_6, window_bounds = array<i64: 128, 128>}]} {
    %c0 = arith.constant 0 : index
    %c0_0 = arith.constant 0 : index
    %0 = vector.load %arg1[%c0, %c0_0] : memref<128x128xbf16, #tpu.memory_space<vmem>>, vector<128x128xbf16>
    %1 = arith.extf %0 : vector<128x128xbf16> to vector<128x128xf32>
    %c0_1 = arith.constant 0 : index
    %c0_2 = arith.constant 0 : index
    %2 = vector.load %arg2[%c0_1, %c0_2] : memref<1x128xf32, #tpu.memory_space<vmem>>, vector<1x128xf32>
    %3 = vector.broadcast %2 : vector<1x128xf32> to vector<128x128xf32>
    %4 = arith.mulf %1, %3 : vector<128x128xf32>
    %c0_3 = arith.constant 0 : index
    %c0_4 = arith.constant 0 : index
    %5 = vector.load %arg3[%c0_3, %c0_4] : memref<1x128xf32, #tpu.memory_space<vmem>>, vector<1x128xf32>
    %6 = vector.broadcast %5 : vector<1x128xf32> to vector<128x128xf32>
    %7 = arith.addf %4, %6 : vector<128x128xf32>
    %c0_5 = arith.constant 0 : index
    %c0_6 = arith.constant 0 : index
    %8 = vector.load %arg4[%c0_5, %c0_6] : memref<128x128xbf16, #tpu.memory_space<vmem>>, vector<128x128xbf16>
    %9 = arith.extf %8 : vector<128x128xbf16> to vector<128x128xf32>
    %c0_7 = arith.constant 0 : index
    %c0_8 = arith.constant 0 : index
    %10 = vector.load %arg5[%c0_7, %c0_8] : memref<1x128xf32, #tpu.memory_space<vmem>>, vector<1x128xf32>
    %11 = vector.broadcast %10 : vector<1x128xf32> to vector<128x128xf32>
    %12 = arith.mulf %9, %11 : vector<128x128xf32>
    %c0_9 = arith.constant 0 : index
    %c0_10 = arith.constant 0 : index
    %13 = vector.load %arg6[%c0_9, %c0_10] : memref<1x128xf32, #tpu.memory_space<vmem>>, vector<1x128xf32>
    %14 = vector.broadcast %13 : vector<1x128xf32> to vector<128x128xf32>
    %15 = arith.addf %12, %14 : vector<128x128xf32>
    %16 = arith.addf %7, %15 : vector<128x128xf32>
    %cst = arith.constant 0.000000e+00 : f32
    %17 = vector.broadcast %cst : f32 to vector<128x128xf32>
    %18 = arith.maximumf %16, %17 : vector<128x128xf32>
    %c0_11 = arith.constant 0 : index
    %c0_12 = arith.constant 0 : index
    %19 = vector.load %arg7[%c0_11, %c0_12] : memref<128x128xf32, #tpu.memory_space<vmem>>, vector<128x128xf32>
    tpu.vector_store %arg7[%c0_11, %c0_12], %18 {strides = array<i32>} : memref<128x128xf32, #tpu.memory_space<vmem>>, vector<128x128xf32>,
    return
  }
  func.func @transform_0(%arg0: i32) -> (i32, i32) {
    %c0_i32 = arith.constant 0 : i32
    %c0_i32_0 = arith.constant 0 : i32
    return %arg0, %c0_i32 : i32, i32
  }
  func.func @transform_1(%arg0: i32) -> (i32, i32) {
    %c0_i32 = arith.constant 0 : i32
    %c0_i32_0 = arith.constant 0 : i32
    %c0_i32_1 = arith.constant 0 : i32
    return %c0_i32, %c0_i32_0 : i32, i32
  }
  func.func @transform_2(%arg0: i32) -> (i32, i32) {
    %c0_i32 = arith.constant 0 : i32
    %c0_i32_0 = arith.constant 0 : i32
    %c0_i32_1 = arith.constant 0 : i32
    return %c0_i32, %c0_i32_0 : i32, i32
  }
  func.func @transform_3(%arg0: i32) -> (i32, i32) {
    %c0_i32 = arith.constant 0 : i32
    %c0_i32_0 = arith.constant 0 : i32
    return %arg0, %c0_i32 : i32, i32
  }
  func.func @transform_4(%arg0: i32) -> (i32, i32) {
    %c0_i32 = arith.constant 0 : i32
    %c0_i32_0 = arith.constant 0 : i32
    %c0_i32_1 = arith.constant 0 : i32
    return %c0_i32, %c0_i32_0 : i32, i32
  }
  func.func @transform_5(%arg0: i32) -> (i32, i32) {
    %c0_i32 = arith.constant 0 : i32
    %c0_i32_0 = arith.constant 0 : i32
    %c0_i32_1 = arith.constant 0 : i32
    return %c0_i32, %c0_i32_0 : i32, i32
  }
  func.func @transform_6(%arg0: i32) -> (i32, i32) {
    %c0_i32 = arith.constant 0 : i32
    %c0_i32_0 = arith.constant 0 : i32
    return %arg0, %c0_i32 : i32, i32
  }
}

</mosaic_0001>

<bundles_post_ra>
// kernel: _lambda_.5
= control target key start
LH: loop header
LB: loop body
LE: loop exit
PB: predicated region body
PF: predicated region fallthrough
CT: control target
= control target key end

     0   :  { %vm116_vm0 = vcmask 1041408   ;;  %vm91_vm1 = vcmask 293888   ;;  %s489_s1 = inlined_call_operand.vmem [shape: bf16[36,128], index: 1, kind: input, shape index: {}]   ;;  %s490_s0 = inlined_call_operand.vmem [shape: bf16[128,36], index: 0, kind: input, shape index: {}]   ;;  %s491_s2 = inlined_call_operand.vmem [shape: bf16[128,128], index: 2, kind: output, shape index: {0}]   ;;  %s492_s3 = inlined_call_operand.vmem [shape: f32[1,1,128], index: 3, kind: output, shape index: {1}]   ;;  %s493_s4 = inlined_call_operand.vmem [shape: f32[1,1,128], index: 4, kind: output, shape index: {2}]  }
   0x1   :  { %v35_v0 = vld [vmem:[%s489_s1 + $0x10] sm:$0x3]  ;;  %v330_v4 = vld [vmem:[%s489_s1 + $0x8] sm:$0xff]  ;;  %v329_v5 = vld [vmem:[%s489_s1] sm:$0xff] }
   0x2   :  { %v85_v1 = vunpack.c.l.b16 %v35_v0  ;;  %v321_v6 = vld [vmem:[%s490_s0] sm:$0xff]  ;;  %v323_v7 = vld [vmem:[%s490_s0 + $0x10] sm:$0xff]  ;;  %v322_v10 = vld [vmem:[%s490_s0 + $0x8] sm:$0xff] }
   0x3   :  { %v325_v8 = vld [vmem:[%s490_s0 + $0x20] sm:$0xff]  ;;  %v327_v9 = vld [vmem:[%s490_s0 + $0x30] sm:$0xff]  ;;  %v324_v11 = vld [vmem:[%s490_s0 + $0x18] sm:$0xff] }
   0x4   :  { %v88_v2 = vpack.c.b16 %v85_v1, %v85_v1  ;;  %v326_v12 = vld [vmem:[%s490_s0 + $0x28] sm:$0xff]  ;;  %v328_v13 = vld [vmem:[%s490_s0 + $0x38] sm:$0xff] }
   0x6   :  { %v118_v3 = vsel %vm116_vm0, %v88_v2, 0 }
   0x7   :  { %125 = vmatpush.bf16.msra.mxu0 %v118_v3  ;;  %378 = vmatpush.bf16.msra.mxu1 %v118_v3 }
   0x8   :  { %379 = vmatpush.bf16.msra.mxu2 %v118_v3  ;;  %380 = vmatpush.bf16.msra.mxu3 %v118_v3 }
   0xb   :  { %126 = vmatpush.bf16.msra.mxu0 %v330_v4  ;;  %381 = vmatpush.bf16.msra.mxu1 %v330_v4 }
   0xc   :  { %382 = vmatpush.bf16.msra.mxu2 %v330_v4  ;;  %383 = vmatpush.bf16.msra.mxu3 %v330_v4 }
   0xf   :  { %127 = vmatpush.bf16.msra.mxu0 %v329_v5  ;;  %384 = vmatpush.bf16.msra.mxu1 %v329_v5 }
  0x10   :  { %385 = vmatpush.bf16.msra.mxu2 %v329_v5  ;;  %386 = vmatpush.bf16.msra.mxu3 %v329_v5 }
  0x12   :  { %313 = vmatmul.msk.bf16.vlgmr.msra.gmra.mxu0 %vm91_vm1, %v321_v6  ;;  %315 = vmatmul.msk.bf16.vlgmr.msra.gmra.mxu1 %vm91_vm1, %v323_v7 }
  0x13   :  { %317 = vmatmul.msk.bf16.vlgmr.msra.gmra.mxu2 %vm91_vm1, %v325_v8  ;;  %319 = vmatmul.msk.bf16.vlgmr.msra.gmra.mxu3 %vm91_vm1, %v327_v9 }
  0x22   :  { %314 = vmatmul.msk.bf16.gmra.mxu0 %vm91_vm1, %v322_v10  ;;  %316 = vmatmul.msk.bf16.gmra.mxu1 %vm91_vm1, %v324_v11 }
  0x23   :  { %318 = vmatmul.msk.bf16.gmra.mxu2 %vm91_vm1, %v326_v12  ;;  %320 = vmatmul.msk.bf16.gmra.mxu3 %vm91_vm1, %v328_v13 }
  0x8f   :  { %v129_v14 = vpop.f32.mrf.mxu0  ;;  %v139_v15 = vpop.f32.mrf.mxu1 }
  0x90   :  { %v223_v29 = vmul.f32 %v129_v14, %v129_v14  ;;  %v227_v43 = vmul.f32 %v139_v15, %v139_v15 }
  0x96   :  { %v149_v16 = vpop.f32.mrf.mxu2  ;;  %v453_v17 = vpop.f32.mrf.mxu3 }
  0x97   :  { %v131_v18 = vpop.f32.mrf.mxu0  ;;  %v141_v19 = vpop.f32.mrf.mxu1  ;;  %v231_v59 = vmul.f32 %v149_v16, %v149_v16  ;;  %v235_v7 = vmul.f32 %v453_v17, %v453_v17 }
  0x98   :  { %v334_v20 = vpack.c.bf16 %v131_v18, %v129_v14  ;;  %v344_v21 = vpack.c.bf16 %v141_v19, %v139_v15  ;;  %v224_v28 = vmul.f32 %v131_v18, %v131_v18  ;;  %v201_v31 = vadd.f32 %v131_v18, %v129_v14 }
  0x99   :  { %v228_v46 = vmul.f32 %v141_v19, %v141_v19 }
  0x9a   :  { %335 = vst [vmem:[%s491_s2] sm:$0xff] %v334_v20   ;;  %v239_v32 = vadd.f32 %v224_v28, %v223_v29 }
  0x9b   :  { %372 = vst [vmem:[%s491_s2 + $0x10] sm:$0xff] %v344_v21  }
  0x9e   :  { %v151_v22 = vpop.f32.mrf.mxu2  ;;  %v161_v23 = vpop.f32.mrf.mxu3 }
  0x9f   :  { %v134_v24 = vpop.f32.mrf.mxu0  ;;  %v144_v25 = vpop.f32.mrf.mxu1  ;;  %v354_v26 = vpack.c.bf16 %v151_v22, %v149_v16  ;;  %v364_v27 = vpack.c.bf16 %v161_v23, %v453_v17  ;;  %v232_v62 = vmul.f32 %v151_v22, %v151_v22  ;;  %v236_v10 = vmul.f32 %v161_v23, %v161_v23 }
  0xa0   :  { %v225_v30 = vmul.f32 %v134_v24, %v134_v24  ;;  %v202_v33 = vadd.f32 %v201_v31, %v134_v24  ;;  %v229_v49 = vmul.f32 %v144_v25, %v144_v25 }
  0xa1   :  { %374 = vst [vmem:[%s491_s2 + $0x20] sm:$0xff] %v354_v26  }
  0xa2   :  { %376 = vst [vmem:[%s491_s2 + $0x30] sm:$0xff] %v364_v27   ;;  %v240_v36 = vadd.f32 %v239_v32, %v225_v30 }
  0xa6   :  { %v154_v34 = vpop.f32.mrf.mxu2  ;;  %v164_v35 = vpop.f32.mrf.mxu3 }
  0xa7   :  { %v136_v37 = vpop.f32.mrf.mxu0  ;;  %v146_v38 = vpop.f32.mrf.mxu1  ;;  %v233_v2 = vmul.f32 %v154_v34, %v154_v34  ;;  %v237_v14 = vmul.f32 %v164_v35, %v164_v35 }
  0xa8   :  { %v339_v39 = vpack.c.bf16 %v136_v37, %v134_v24  ;;  %v203_v40 = vadd.f32 %v202_v33, %v136_v37  ;;  %v226_v41 = vmul.f32 %v136_v37, %v136_v37  ;;  %v349_v42 = vpack.c.bf16 %v146_v38, %v144_v25 }
  0xa9   :  { %v230_v57 = vmul.f32 %v146_v38, %v146_v38 }
  0xaa   :  { %371 = vst [vmem:[%s491_s2 + $0x8] sm:$0xff] %v339_v39   ;;  %v204_v44 = vadd.f32 %v203_v40, %v139_v15  ;;  %v241_v45 = vadd.f32 %v240_v36, %v226_v41 }
  0xab   :  { %373 = vst [vmem:[%s491_s2 + $0x18] sm:$0xff] %v349_v42  }
  0xac   :  { %v242_v47 = vadd.f32 %v241_v45, %v227_v43  ;;  %v205_v48 = vadd.f32 %v204_v44, %v141_v19 }
  0xae   :  { %v206_v50 = vadd.f32 %v205_v48, %v144_v25  ;;  %v243_v51 = vadd.f32 %v242_v47, %v228_v46  ;;  %v156_v52 = vpop.f32.mrf.mxu2  ;;  %v166_v53 = vpop.f32.mrf.mxu3 }
  0xaf   :  { %v359_v54 = vpack.c.bf16 %v156_v52, %v154_v34  ;;  %v369_v55 = vpack.c.bf16 %v166_v53, %v164_v35  ;;  %v234_v6 = vmul.f32 %v156_v52, %v156_v52  ;;  %v238_v19 = vmul.f32 %v166_v53, %v166_v53 }
  0xb0   :  { %v207_v56 = vadd.f32 %v206_v50, %v146_v38  ;;  %v244_v58 = vadd.f32 %v243_v51, %v229_v49 }
  0xb1   :  { %375 = vst [vmem:[%s491_s2 + $0x28] sm:$0xff] %v359_v54  }
  0xb2   :  { %v208_v60 = vadd.f32 %v207_v56, %v149_v16  ;;  %v245_v61 = vadd.f32 %v244_v58, %v230_v57  ;;  %377 = vst [vmem:[%s491_s2 + $0x38] sm:$0xff] %v369_v55  }
  0xb4   :  { %v246_v63 = vadd.f32 %v245_v61, %v231_v59  ;;  %v209_v0 = vadd.f32 %v208_v60, %v151_v22 }
  0xb6   :  { %v210_v1 = vadd.f32 %v209_v0, %v154_v34  ;;  %v247_v3 = vadd.f32 %v246_v63, %v232_v62 }
  0xb8   :  { %v248_v4 = vadd.f32 %v247_v3, %v233_v2  ;;  %v211_v5 = vadd.f32 %v210_v1, %v156_v52 }
  0xba   :  { %v212_v8 = vadd.f32 %v211_v5, %v453_v17  ;;  %v249_v9 = vadd.f32 %v248_v4, %v234_v6 }
  0xbc   :  { %v250_v11 = vadd.f32 %v249_v9, %v235_v7  ;;  %v213_v12 = vadd.f32 %v212_v8, %v161_v23 }
  0xbe   :  { %v214_v13 = vadd.f32 %v213_v12, %v164_v35  ;;  %v251_v15 = vadd.f32 %v250_v11, %v236_v10 }
  0xc0   :  { %v252_v16 = vadd.f32 %v251_v15, %v237_v14  ;;  %v215_v18 = vadd.f32 %v214_v13, %v166_v53 }
  0xc2   :  { %v216_v20 = vrot.slane %v215_v18, 4  ;;  %v253_v21 = vadd.f32 %v252_v16, %v238_v19 }
  0xc4   :  { %v217_v22 = vadd.f32 %v216_v20, %v215_v18  ;;  %v254_v24 = vrot.slane %v253_v21, 4 }
  0xc6   :  { %v218_v25 = vrot.slane %v217_v22, 2  ;;  %v255_v26 = vadd.f32 %v254_v24, %v253_v21 }
  0xc8   :  { %v219_v27 = vadd.f32 %v218_v25, %v217_v22  ;;  %v256_v28 = vrot.slane %v255_v26, 2 }
  0xca   :  { %v220_v29 = vrot.slane %v219_v27, 1  ;;  %v257_v17 = vadd.f32 %v256_v28, %v255_v26 }
  0xcc   :  { %v221_v30 = vadd.f32 %v220_v29, %v219_v27  ;;  %v258_v31 = vrot.slane %v257_v17, 1 }
  0xce   :  { %222 = vst [vmem:[%s492_s3] sm:$0x1] %v221_v30  ;;  %v259_v23 = vadd.f32 %v258_v31, %v257_v17 }
  0xd0   :  { %260 = vst [vmem:[%s493_s4] sm:$0x1] %v259_v23 }

// kernel: _lambda_.6
= control target key start
LH: loop header
LB: loop body
LE: loop exit
PB: predicated region body
PF: predicated region fallthrough
CT: control target
= control target key end

     0   :  { %s336_s0 = inlined_call_operand.vmem [shape: bf16[128,128], index: 0, kind: input, shape index: {}]   ;;  %s337_s1 = inlined_call_operand.vmem [shape: f32[1,128], index: 1, kind: input, shape index: {}]   ;;  %s338_s2 = inlined_call_operand.vmem [shape: f32[1,128], index: 2, kind: input, shape index: {}]   ;;  %s339_s3 = inlined_call_operand.vmem [shape: bf16[128,128], index: 3, kind: output, shape index: {}]  }
   0x1   :  { %v139_v0 = vld [vmem:[%s336_s0] sm:$0xff]   ;;  %v210_v5 = vld [vmem:[%s336_s0 + $0x8] sm:$0xff]   ;;  %v211_v8 = vld [vmem:[%s336_s0 + $0x10] sm:$0xff]  }
   0x2   :  { %v252_v1 = vld [vmem:[%s337_s1] ss:$0 sm:$0xff]  ;;  %v140_v2 = vunpack.c.l.bf16 %v139_v0  ;;  %v141_v3 = vunpack.c.h.bf16 %v139_v0  ;;  %v144_v6 = vunpack.c.l.bf16 %v210_v5  ;;  %v145_v7 = vunpack.c.h.bf16 %v210_v5  ;;  %v212_v9 = vld [vmem:[%s336_s0 + $0x18] sm:$0xff]   ;;  %v214_v35 = vld [vmem:[%s336_s0 + $0x28] sm:$0xff]  }
   0x3   :  { %v257_v4 = vld [vmem:[%s338_s2] ss:$0 sm:$0xff]  ;;  %v148_v12 = vunpack.c.l.bf16 %v211_v8  ;;  %v149_v13 = vunpack.c.h.bf16 %v211_v8  ;;  %v152_v16 = vunpack.c.l.bf16 %v212_v9  ;;  %v153_v17 = vunpack.c.h.bf16 %v212_v9  ;;  %v215_v40 = vld [vmem:[%s336_s0 + $0x30] sm:$0xff]   ;;  %v216_v45 = vld [vmem:[%s336_s0 + $0x38] sm:$0xff]  }
   0x4   :  { %v50_v10 = vmul.f32 %v252_v1, %v140_v2  ;;  %v51_v11 = vmul.f32 %v252_v1, %v141_v3  ;;  %v52_v14 = vmul.f32 %v252_v1, %v144_v6  ;;  %v53_v15 = vmul.f32 %v252_v1, %v145_v7  ;;  %v213_v26 = vld [vmem:[%s336_s0 + $0x20] sm:$0xff]  }
   0x5   :  { %v54_v20 = vmul.f32 %v252_v1, %v148_v12  ;;  %v55_v21 = vmul.f32 %v252_v1, %v149_v13  ;;  %v56_v24 = vmul.f32 %v252_v1, %v152_v16  ;;  %v57_v25 = vmul.f32 %v252_v1, %v153_v17 }
   0x6   :  { %v70_v18 = vadd.f32 %v257_v4, %v50_v10  ;;  %v71_v19 = vadd.f32 %v257_v4, %v51_v11  ;;  %v72_v22 = vadd.f32 %v257_v4, %v52_v14  ;;  %v73_v23 = vadd.f32 %v257_v4, %v53_v15 }
   0x7   :  { %v74_v29 = vadd.f32 %v257_v4, %v54_v20  ;;  %v75_v30 = vadd.f32 %v257_v4, %v55_v21  ;;  %v76_v33 = vadd.f32 %v257_v4, %v56_v24  ;;  %v77_v34 = vadd.f32 %v257_v4, %v57_v25 }
   0x8   :  { %v86_v27 = vmax.f32 %v70_v18, 0.0  ;;  %v87_v28 = vmax.f32 %v71_v19, 0.0  ;;  %v88_v31 = vmax.f32 %v72_v22, 0.0  ;;  %v89_v32 = vmax.f32 %v73_v23, 0.0 }
   0x9   :  { %v90_v37 = vmax.f32 %v74_v29, 0.0  ;;  %v91_v38 = vmax.f32 %v75_v30, 0.0  ;;  %v156_v39 = vunpack.c.l.bf16 %v213_v26  ;;  %v92_v42 = vmax.f32 %v76_v33, 0.0 }
   0xa   :  { %v173_v36 = vpack.c.bf16 %v87_v28, %v86_v27  ;;  %v178_v41 = vpack.c.bf16 %v89_v32, %v88_v31  ;;  %v93_v43 = vmax.f32 %v77_v34, 0.0  ;;  %v157_v44 = vunpack.c.h.bf16 %v213_v26 }
   0xb   :  { %v183_v46 = vpack.c.bf16 %v91_v38, %v90_v37  ;;  %v58_v47 = vmul.f32 %v252_v1, %v156_v39  ;;  %v160_v48 = vunpack.c.l.bf16 %v214_v35  ;;  %v161_v49 = vunpack.c.h.bf16 %v214_v35 }
   0xc   :  { %174 = vst [vmem:[%s339_s3] sm:$0xff] %v173_v36   ;;  %v188_v50 = vpack.c.bf16 %v93_v43, %v92_v42  ;;  %v59_v51 = vmul.f32 %v252_v1, %v157_v44  ;;  %v164_v52 = vunpack.c.l.bf16 %v215_v40  ;;  %v165_v53 = vunpack.c.h.bf16 %v215_v40 }
   0xd   :  { %217 = vst [vmem:[%s339_s3 + $0x8] sm:$0xff] %v178_v41   ;;  %v78_v54 = vadd.f32 %v257_v4, %v58_v47  ;;  %v60_v55 = vmul.f32 %v252_v1, %v160_v48  ;;  %v61_v56 = vmul.f32 %v252_v1, %v161_v49  ;;  %v168_v57 = vunpack.c.l.bf16 %v216_v45 }
   0xe   :  { %218 = vst [vmem:[%s339_s3 + $0x10] sm:$0xff] %v183_v46   ;;  %v79_v58 = vadd.f32 %v257_v4, %v59_v51  ;;  %v62_v59 = vmul.f32 %v252_v1, %v164_v52  ;;  %v63_v60 = vmul.f32 %v252_v1, %v165_v53  ;;  %v169_v61 = vunpack.c.h.bf16 %v216_v45 }
   0xf   :  { %219 = vst [vmem:[%s339_s3 + $0x18] sm:$0xff] %v188_v50   ;;  %v94_v62 = vmax.f32 %v78_v54, 0.0  ;;  %v80_v63 = vadd.f32 %v257_v4, %v60_v55  ;;  %v81_v0 = vadd.f32 %v257_v4, %v61_v56  ;;  %v64_v2 = vmul.f32 %v252_v1, %v168_v57 }
  0x10   :  { %v95_v3 = vmax.f32 %v79_v58, 0.0  ;;  %v82_v5 = vadd.f32 %v257_v4, %v62_v59  ;;  %v83_v6 = vadd.f32 %v257_v4, %v63_v60  ;;  %v65_v7 = vmul.f32 %v252_v1, %v169_v61 }
  0x11   :  { %v96_v8 = vmax.f32 %v80_v63, 0.0  ;;  %v97_v9 = vmax.f32 %v81_v0, 0.0  ;;  %v84_v10 = vadd.f32 %v257_v4, %v64_v2 }
  0x12   :  { %v193_v11 = vpack.c.bf16 %v95_v3, %v94_v62  ;;  %v98_v12 = vmax.f32 %v82_v5, 0.0  ;;  %v99_v13 = vmax.f32 %v83_v6, 0.0  ;;  %v85_v14 = vadd.f32 %v257_v4, %v65_v7 }
  0x13   :  { %v198_v15 = vpack.c.bf16 %v97_v9, %v96_v8  ;;  %v100_v16 = vmax.f32 %v84_v10, 0.0 }
  0x14   :  { %220 = vst [vmem:[%s339_s3 + $0x20] sm:$0xff] %v193_v11   ;;  %v203_v17 = vpack.c.bf16 %v99_v13, %v98_v12  ;;  %v101_v18 = vmax.f32 %v85_v14, 0.0 }
  0x15   :  { %221 = vst [vmem:[%s339_s3 + $0x28] sm:$0xff] %v198_v15  }
  0x16   :  { %222 = vst [vmem:[%s339_s3 + $0x30] sm:$0xff] %v203_v17   ;;  %v208_v1 = vpack.c.bf16 %v101_v18, %v100_v16 }
  0x18   :  { %223 = vst [vmem:[%s339_s3 + $0x38] sm:$0xff] %v208_v1  }

// kernel: _lambda_.8
= control target key start
LH: loop header
LB: loop body
LE: loop exit
PB: predicated region body
PF: predicated region fallthrough
CT: control target
= control target key end

     0   :  { %vm132_vm0 = vcmask 1043456   ;;  %vm107_vm1 = vcmask 588800   ;;  %s527_s1 = inlined_call_operand.vmem [shape: bf16[72,128], index: 1, kind: input, shape index: {}]   ;;  %s528_s0 = inlined_call_operand.vmem [shape: bf16[128,72], index: 0, kind: input, shape index: {}]   ;;  %s529_s2 = inlined_call_operand.vmem [shape: bf16[128,128], index: 2, kind: output, shape index: {0}]   ;;  %s530_s3 = inlined_call_operand.vmem [shape: f32[1,1,128], index: 3, kind: output, shape index: {1}]   ;;  %s531_s4 = inlined_call_operand.vmem [shape: f32[1,1,128], index: 4, kind: output, shape index: {2}]  }
   0x1   :  { %v39_v0 = vld [vmem:[%s527_s1 + $0x20] sm:$0xf]  ;;  %v356_v4 = vld [vmem:[%s527_s1 + $0x18] sm:$0xff]  ;;  %v355_v5 = vld [vmem:[%s527_s1 + $0x10] sm:$0xff] }
   0x2   :  { %v97_v1 = vunpack.c.l.b16 %v39_v0  ;;  %v354_v6 = vld [vmem:[%s527_s1 + $0x8] sm:$0xff]  ;;  %v353_v7 = vld [vmem:[%s527_s1] sm:$0xff]  ;;  %v347_v9 = vld [vmem:[%s528_s0 + $0x10] sm:$0xff] }
   0x3   :  { %v345_v8 = vld [vmem:[%s528_s0] sm:$0xff]  ;;  %v351_v11 = vld [vmem:[%s528_s0 + $0x30] sm:$0xff]  ;;  %v346_v12 = vld [vmem:[%s528_s0 + $0x8] sm:$0xff] }
   0x4   :  { %v102_v2 = vpack.c.b16 %v97_v1, %v97_v1  ;;  %v349_v10 = vld [vmem:[%s528_s0 + $0x20] sm:$0xff]  ;;  %v348_v13 = vld [vmem:[%s528_s0 + $0x18] sm:$0xff]  ;;  %v350_v14 = vld [vmem:[%s528_s0 + $0x28] sm:$0xff] }
   0x5   :  { %v352_v15 = vld [vmem:[%s528_s0 + $0x38] sm:$0xff] }
   0x6   :  { %v134_v3 = vsel %vm132_vm0, %v102_v2, 0 }
   0x7   :  { %139 = vmatpush.bf16.msra.mxu0 %v134_v3  ;;  %404 = vmatpush.bf16.msra.mxu1 %v134_v3 }
   0x8   :  { %405 = vmatpush.bf16.msra.mxu2 %v134_v3  ;;  %406 = vmatpush.bf16.msra.mxu3 %v134_v3 }
   0xb   :  { %140 = vmatpush.bf16.msra.mxu0 %v356_v4  ;;  %407 = vmatpush.bf16.msra.mxu1 %v356_v4 }
   0xc   :  { %408 = vmatpush.bf16.msra.mxu2 %v356_v4  ;;  %409 = vmatpush.bf16.msra.mxu3 %v356_v4 }
   0xf   :  { %141 = vmatpush.bf16.msra.mxu0 %v355_v5  ;;  %410 = vmatpush.bf16.msra.mxu1 %v355_v5 }
  0x10   :  { %411 = vmatpush.bf16.msra.mxu2 %v355_v5  ;;  %412 = vmatpush.bf16.msra.mxu3 %v355_v5 }
  0x13   :  { %142 = vmatpush.bf16.msra.mxu0 %v354_v6  ;;  %413 = vmatpush.bf16.msra.mxu1 %v354_v6 }
  0x14   :  { %414 = vmatpush.bf16.msra.mxu2 %v354_v6  ;;  %415 = vmatpush.bf16.msra.mxu3 %v354_v6 }
  0x17   :  { %143 = vmatpush.bf16.msra.mxu0 %v353_v7  ;;  %416 = vmatpush.bf16.msra.mxu1 %v353_v7 }
  0x18   :  { %417 = vmatpush.bf16.msra.mxu2 %v353_v7  ;;  %418 = vmatpush.bf16.msra.mxu3 %v353_v7 }
  0x1a   :  { %337 = vmatmul.msk.bf16.vlgmr.msra.gmra.mxu0 %vm107_vm1, %v345_v8  ;;  %339 = vmatmul.msk.bf16.vlgmr.msra.gmra.mxu1 %vm107_vm1, %v347_v9 }
  0x1b   :  { %341 = vmatmul.msk.bf16.vlgmr.msra.gmra.mxu2 %vm107_vm1, %v349_v10  ;;  %343 = vmatmul.msk.bf16.vlgmr.msra.gmra.mxu3 %vm107_vm1, %v351_v11 }
  0x2a   :  { %338 = vmatmul.msk.bf16.gmra.mxu0 %vm107_vm1, %v346_v12  ;;  %340 = vmatmul.msk.bf16.gmra.mxu1 %vm107_vm1, %v348_v13 }
  0x2b   :  { %342 = vmatmul.msk.bf16.gmra.mxu2 %vm107_vm1, %v350_v14  ;;  %344 = vmatmul.msk.bf16.gmra.mxu3 %vm107_vm1, %v352_v15 }
  0x97   :  { %v145_v16 = vpop.f32.mrf.mxu0  ;;  %v155_v17 = vpop.f32.mrf.mxu1 }
  0x98   :  { %v239_v31 = vmul.f32 %v145_v16, %v145_v16  ;;  %v243_v45 = vmul.f32 %v155_v17, %v155_v17 }
  0x9e   :  { %v165_v18 = vpop.f32.mrf.mxu2  ;;  %v491_v19 = vpop.f32.mrf.mxu3 }
  0x9f   :  { %v147_v20 = vpop.f32.mrf.mxu0  ;;  %v157_v21 = vpop.f32.mrf.mxu1  ;;  %v247_v61 = vmul.f32 %v165_v18, %v165_v18  ;;  %v251_v9 = vmul.f32 %v491_v19, %v491_v19 }
  0xa0   :  { %v360_v22 = vpack.c.bf16 %v147_v20, %v145_v16  ;;  %v370_v23 = vpack.c.bf16 %v157_v21, %v155_v17  ;;  %v240_v30 = vmul.f32 %v147_v20, %v147_v20  ;;  %v217_v33 = vadd.f32 %v147_v20, %v145_v16 }
  0xa1   :  { %v244_v48 = vmul.f32 %v157_v21, %v157_v21 }
  0xa2   :  { %361 = vst [vmem:[%s529_s2] sm:$0xff] %v360_v22   ;;  %v255_v34 = vadd.f32 %v240_v30, %v239_v31 }
  0xa3   :  { %398 = vst [vmem:[%s529_s2 + $0x10] sm:$0xff] %v370_v23  }
  0xa6   :  { %v167_v24 = vpop.f32.mrf.mxu2  ;;  %v177_v25 = vpop.f32.mrf.mxu3 }
  0xa7   :  { %v150_v26 = vpop.f32.mrf.mxu0  ;;  %v160_v27 = vpop.f32.mrf.mxu1  ;;  %v380_v28 = vpack.c.bf16 %v167_v24, %v165_v18  ;;  %v390_v29 = vpack.c.bf16 %v177_v25, %v491_v19  ;;  %v248_v0 = vmul.f32 %v167_v24, %v167_v24  ;;  %v252_v12 = vmul.f32 %v177_v25, %v177_v25 }
  0xa8   :  { %v241_v32 = vmul.f32 %v150_v26, %v150_v26  ;;  %v218_v35 = vadd.f32 %v217_v33, %v150_v26  ;;  %v245_v51 = vmul.f32 %v160_v27, %v160_v27 }
  0xa9   :  { %400 = vst [vmem:[%s529_s2 + $0x20] sm:$0xff] %v380_v28  }
  0xaa   :  { %402 = vst [vmem:[%s529_s2 + $0x30] sm:$0xff] %v390_v29   ;;  %v256_v38 = vadd.f32 %v255_v34, %v241_v32 }
  0xae   :  { %v170_v36 = vpop.f32.mrf.mxu2  ;;  %v180_v37 = vpop.f32.mrf.mxu3 }
  0xaf   :  { %v152_v39 = vpop.f32.mrf.mxu0  ;;  %v162_v40 = vpop.f32.mrf.mxu1  ;;  %v249_v4 = vmul.f32 %v170_v36, %v170_v36  ;;  %v253_v16 = vmul.f32 %v180_v37, %v180_v37 }
  0xb0   :  { %v365_v41 = vpack.c.bf16 %v152_v39, %v150_v26  ;;  %v219_v42 = vadd.f32 %v218_v35, %v152_v39  ;;  %v242_v43 = vmul.f32 %v152_v39, %v152_v39  ;;  %v375_v44 = vpack.c.bf16 %v162_v40, %v160_v27 }
  0xb1   :  { %v246_v59 = vmul.f32 %v162_v40, %v162_v40 }
  0xb2   :  { %397 = vst [vmem:[%s529_s2 + $0x8] sm:$0xff] %v365_v41   ;;  %v220_v46 = vadd.f32 %v219_v42, %v155_v17  ;;  %v257_v47 = vadd.f32 %v256_v38, %v242_v43 }
  0xb3   :  { %399 = vst [vmem:[%s529_s2 + $0x18] sm:$0xff] %v375_v44  }
  0xb4   :  { %v258_v49 = vadd.f32 %v257_v47, %v243_v45  ;;  %v221_v50 = vadd.f32 %v220_v46, %v157_v21 }
  0xb6   :  { %v222_v52 = vadd.f32 %v221_v50, %v160_v27  ;;  %v259_v53 = vadd.f32 %v258_v49, %v244_v48  ;;  %v172_v54 = vpop.f32.mrf.mxu2  ;;  %v182_v55 = vpop.f32.mrf.mxu3 }
  0xb7   :  { %v385_v56 = vpack.c.bf16 %v172_v54, %v170_v36  ;;  %v395_v57 = vpack.c.bf16 %v182_v55, %v180_v37  ;;  %v250_v8 = vmul.f32 %v172_v54, %v172_v54  ;;  %v254_v21 = vmul.f32 %v182_v55, %v182_v55 }
  0xb8   :  { %v223_v58 = vadd.f32 %v222_v52, %v162_v40  ;;  %v260_v60 = vadd.f32 %v259_v53, %v245_v51 }
  0xb9   :  { %401 = vst [vmem:[%s529_s2 + $0x28] sm:$0xff] %v385_v56  }
  0xba   :  { %v224_v62 = vadd.f32 %v223_v58, %v165_v18  ;;  %v261_v63 = vadd.f32 %v260_v60, %v246_v59  ;;  %403 = vst [vmem:[%s529_s2 + $0x38] sm:$0xff] %v395_v57  }
  0xbc   :  { %v262_v1 = vadd.f32 %v261_v63, %v247_v61  ;;  %v225_v2 = vadd.f32 %v224_v62, %v167_v24 }
  0xbe   :  { %v226_v3 = vadd.f32 %v225_v2, %v170_v36  ;;  %v263_v5 = vadd.f32 %v262_v1, %v248_v0 }
  0xc0   :  { %v264_v6 = vadd.f32 %v263_v5, %v249_v4  ;;  %v227_v7 = vadd.f32 %v226_v3, %v172_v54 }
  0xc2   :  { %v228_v10 = vadd.f32 %v227_v7, %v491_v19  ;;  %v265_v11 = vadd.f32 %v264_v6, %v250_v8 }
  0xc4   :  { %v266_v13 = vadd.f32 %v265_v11, %v251_v9  ;;  %v229_v14 = vadd.f32 %v228_v10, %v177_v25 }
  0xc6   :  { %v230_v15 = vadd.f32 %v229_v14, %v180_v37  ;;  %v267_v17 = vadd.f32 %v266_v13, %v252_v12 }
  0xc8   :  { %v268_v18 = vadd.f32 %v267_v17, %v253_v16  ;;  %v231_v20 = vadd.f32 %v230_v15, %v182_v55 }
  0xca   :  { %v232_v22 = vrot.slane %v231_v20, 4  ;;  %v269_v23 = vadd.f32 %v268_v18, %v254_v21 }
  0xcc   :  { %v233_v24 = vadd.f32 %v232_v22, %v231_v20  ;;  %v270_v26 = vrot.slane %v269_v23, 4 }
  0xce   :  { %v234_v27 = vrot.slane %v233_v24, 2  ;;  %v271_v28 = vadd.f32 %v270_v26, %v269_v23 }
  0xd0   :  { %v235_v29 = vadd.f32 %v234_v27, %v233_v24  ;;  %v272_v30 = vrot.slane %v271_v28, 2 }
  0xd2   :  { %v236_v31 = vrot.slane %v235_v29, 1  ;;  %v273_v19 = vadd.f32 %v272_v30, %v271_v28 }
  0xd4   :  { %v237_v32 = vadd.f32 %v236_v31, %v235_v29  ;;  %v274_v33 = vrot.slane %v273_v19, 1 }
  0xd6   :  { %238 = vst [vmem:[%s530_s3] sm:$0x1] %v237_v32  ;;  %v275_v25 = vadd.f32 %v274_v33, %v273_v19 }
  0xd8   :  { %276 = vst [vmem:[%s531_s4] sm:$0x1] %v275_v25 }

// kernel: _lambda_.7
= control target key start
LH: loop header
LB: loop body
LE: loop exit
PB: predicated region body
PF: predicated region fallthrough
CT: control target
= control target key end

     0   :  { %vm97_vm0 = vcmask 1041408   ;;  %vm72_vm1 = vcmask 31744   ;;  %s448_s1 = inlined_call_operand.vmem [shape: bf16[4,128], index: 1, kind: input, shape index: {}]   ;;  %s449_s0 = inlined_call_operand.vmem [shape: bf16[128,4], index: 0, kind: input, shape index: {}]   ;;  %s450_s2 = inlined_call_operand.vmem [shape: bf16[128,128], index: 2, kind: output, shape index: {0}]   ;;  %s451_s3 = inlined_call_operand.vmem [shape: f32[1,1,128], index: 3, kind: output, shape index: {1}]   ;;  %s452_s4 = inlined_call_operand.vmem [shape: f32[1,1,128], index: 4, kind: output, shape index: {2}]  }
   0x1   :  { %v31_v0 = vld [vmem:[%s448_s1] sm:$0x3]  ;;  %v296_v3 = vld [vmem:[%s449_s0 + $0x10] sm:$0xff]  ;;  %v295_v6 = vld [vmem:[%s449_s0 + $0x8] sm:$0xff] }
   0x2   :  { %v99_v1 = vsel %vm97_vm0, %v31_v0, 0  ;;  %v294_v2 = vld [vmem:[%s449_s0] sm:$0xff]  ;;  %v300_v5 = vld [vmem:[%s449_s0 + $0x30] sm:$0xff]  ;;  %v297_v7 = vld [vmem:[%s449_s0 + $0x18] sm:$0xff] }
   0x3   :  { %108 = vmatpush.bf16.msra.mxu0 %v99_v1  ;;  %349 = vmatpush.bf16.msra.mxu1 %v99_v1  ;;  %v298_v4 = vld [vmem:[%s449_s0 + $0x20] sm:$0xff]  ;;  %v299_v8 = vld [vmem:[%s449_s0 + $0x28] sm:$0xff]  ;;  %v301_v9 = vld [vmem:[%s449_s0 + $0x38] sm:$0xff] }
   0x4   :  { %350 = vmatpush.bf16.msra.mxu2 %v99_v1  ;;  %351 = vmatpush.bf16.msra.mxu3 %v99_v1 }
   0x6   :  { %286 = vmatmul.msk.bf16.vlgmr.msra.gmra.mxu0 %vm72_vm1, %v294_v2  ;;  %288 = vmatmul.msk.bf16.vlgmr.msra.gmra.mxu1 %vm72_vm1, %v296_v3 }
   0x7   :  { %290 = vmatmul.msk.bf16.vlgmr.msra.gmra.mxu2 %vm72_vm1, %v298_v4  ;;  %292 = vmatmul.msk.bf16.vlgmr.msra.gmra.mxu3 %vm72_vm1, %v300_v5 }
  0x16   :  { %287 = vmatmul.msk.bf16.gmra.mxu0 %vm72_vm1, %v295_v6  ;;  %289 = vmatmul.msk.bf16.gmra.mxu1 %vm72_vm1, %v297_v7 }
  0x17   :  { %291 = vmatmul.msk.bf16.gmra.mxu2 %vm72_vm1, %v299_v8  ;;  %293 = vmatmul.msk.bf16.gmra.mxu3 %vm72_vm1, %v301_v9 }
  0x83   :  { %v110_v10 = vpop.f32.mrf.mxu0  ;;  %v120_v11 = vpop.f32.mrf.mxu1 }
  0x84   :  { %v204_v25 = vmul.f32 %v110_v10, %v110_v10  ;;  %v208_v39 = vmul.f32 %v120_v11, %v120_v11 }
  0x8a   :  { %v130_v12 = vpop.f32.mrf.mxu2  ;;  %v412_v13 = vpop.f32.mrf.mxu3 }
  0x8b   :  { %v112_v14 = vpop.f32.mrf.mxu0  ;;  %v122_v15 = vpop.f32.mrf.mxu1  ;;  %v212_v55 = vmul.f32 %v130_v12, %v130_v12  ;;  %v216_v3 = vmul.f32 %v412_v13, %v412_v13 }
  0x8c   :  { %v305_v16 = vpack.c.bf16 %v112_v14, %v110_v10  ;;  %v315_v17 = vpack.c.bf16 %v122_v15, %v120_v11  ;;  %v205_v24 = vmul.f32 %v112_v14, %v112_v14  ;;  %v182_v27 = vadd.f32 %v112_v14, %v110_v10 }
  0x8d   :  { %v209_v42 = vmul.f32 %v122_v15, %v122_v15 }
  0x8e   :  { %306 = vst [vmem:[%s450_s2] sm:$0xff] %v305_v16   ;;  %v220_v28 = vadd.f32 %v205_v24, %v204_v25 }
  0x8f   :  { %343 = vst [vmem:[%s450_s2 + $0x10] sm:$0xff] %v315_v17  }
  0x92   :  { %v132_v18 = vpop.f32.mrf.mxu2  ;;  %v142_v19 = vpop.f32.mrf.mxu3 }
  0x93   :  { %v115_v20 = vpop.f32.mrf.mxu0  ;;  %v125_v21 = vpop.f32.mrf.mxu1  ;;  %v325_v22 = vpack.c.bf16 %v132_v18, %v130_v12  ;;  %v335_v23 = vpack.c.bf16 %v142_v19, %v412_v13  ;;  %v213_v58 = vmul.f32 %v132_v18, %v132_v18  ;;  %v217_v6 = vmul.f32 %v142_v19, %v142_v19 }
  0x94   :  { %v206_v26 = vmul.f32 %v115_v20, %v115_v20  ;;  %v183_v29 = vadd.f32 %v182_v27, %v115_v20  ;;  %v210_v45 = vmul.f32 %v125_v21, %v125_v21 }
  0x95   :  { %345 = vst [vmem:[%s450_s2 + $0x20] sm:$0xff] %v325_v22  }
  0x96   :  { %347 = vst [vmem:[%s450_s2 + $0x30] sm:$0xff] %v335_v23   ;;  %v221_v32 = vadd.f32 %v220_v28, %v206_v26 }
  0x9a   :  { %v135_v30 = vpop.f32.mrf.mxu2  ;;  %v145_v31 = vpop.f32.mrf.mxu3 }
  0x9b   :  { %v117_v33 = vpop.f32.mrf.mxu0  ;;  %v127_v34 = vpop.f32.mrf.mxu1  ;;  %v214_v62 = vmul.f32 %v135_v30, %v135_v30  ;;  %v218_v10 = vmul.f32 %v145_v31, %v145_v31 }
  0x9c   :  { %v310_v35 = vpack.c.bf16 %v117_v33, %v115_v20  ;;  %v184_v36 = vadd.f32 %v183_v29, %v117_v33  ;;  %v207_v37 = vmul.f32 %v117_v33, %v117_v33  ;;  %v320_v38 = vpack.c.bf16 %v127_v34, %v125_v21 }
  0x9d   :  { %v211_v53 = vmul.f32 %v127_v34, %v127_v34 }
  0x9e   :  { %342 = vst [vmem:[%s450_s2 + $0x8] sm:$0xff] %v310_v35   ;;  %v185_v40 = vadd.f32 %v184_v36, %v120_v11  ;;  %v222_v41 = vadd.f32 %v221_v32, %v207_v37 }
  0x9f   :  { %344 = vst [vmem:[%s450_s2 + $0x18] sm:$0xff] %v320_v38  }
  0xa0   :  { %v223_v43 = vadd.f32 %v222_v41, %v208_v39  ;;  %v186_v44 = vadd.f32 %v185_v40, %v122_v15 }
  0xa2   :  { %v187_v46 = vadd.f32 %v186_v44, %v125_v21  ;;  %v224_v47 = vadd.f32 %v223_v43, %v209_v42  ;;  %v137_v48 = vpop.f32.mrf.mxu2  ;;  %v147_v49 = vpop.f32.mrf.mxu3 }
  0xa3   :  { %v330_v50 = vpack.c.bf16 %v137_v48, %v135_v30  ;;  %v340_v51 = vpack.c.bf16 %v147_v49, %v145_v31  ;;  %v215_v2 = vmul.f32 %v137_v48, %v137_v48  ;;  %v219_v15 = vmul.f32 %v147_v49, %v147_v49 }
  0xa4   :  { %v188_v52 = vadd.f32 %v187_v46, %v127_v34  ;;  %v225_v54 = vadd.f32 %v224_v47, %v210_v45 }
  0xa5   :  { %346 = vst [vmem:[%s450_s2 + $0x28] sm:$0xff] %v330_v50  }
  0xa6   :  { %v189_v56 = vadd.f32 %v188_v52, %v130_v12  ;;  %v226_v57 = vadd.f32 %v225_v54, %v211_v53  ;;  %348 = vst [vmem:[%s450_s2 + $0x38] sm:$0xff] %v340_v51  }
  0xa8   :  { %v227_v59 = vadd.f32 %v226_v57, %v212_v55  ;;  %v190_v60 = vadd.f32 %v189_v56, %v132_v18 }
  0xaa   :  { %v191_v61 = vadd.f32 %v190_v60, %v135_v30  ;;  %v228_v63 = vadd.f32 %v227_v59, %v213_v58 }
  0xac   :  { %v229_v0 = vadd.f32 %v228_v63, %v214_v62  ;;  %v192_v1 = vadd.f32 %v191_v61, %v137_v48 }
  0xae   :  { %v193_v4 = vadd.f32 %v192_v1, %v412_v13  ;;  %v230_v5 = vadd.f32 %v229_v0, %v215_v2 }
  0xb0   :  { %v231_v7 = vadd.f32 %v230_v5, %v216_v3  ;;  %v194_v8 = vadd.f32 %v193_v4, %v142_v19 }
  0xb2   :  { %v195_v9 = vadd.f32 %v194_v8, %v145_v31  ;;  %v232_v11 = vadd.f32 %v231_v7, %v217_v6 }
  0xb4   :  { %v233_v12 = vadd.f32 %v232_v11, %v218_v10  ;;  %v196_v14 = vadd.f32 %v195_v9, %v147_v49 }
  0xb6   :  { %v197_v16 = vrot.slane %v196_v14, 4  ;;  %v234_v17 = vadd.f32 %v233_v12, %v219_v15 }
  0xb8   :  { %v198_v18 = vadd.f32 %v197_v16, %v196_v14  ;;  %v235_v20 = vrot.slane %v234_v17, 4 }
  0xba   :  { %v199_v21 = vrot.slane %v198_v18, 2  ;;  %v236_v22 = vadd.f32 %v235_v20, %v234_v17 }
  0xbc   :  { %v200_v23 = vadd.f32 %v199_v21, %v198_v18  ;;  %v237_v24 = vrot.slane %v236_v22, 2 }
  0xbe   :  { %v201_v25 = vrot.slane %v200_v23, 1  ;;  %v238_v13 = vadd.f32 %v237_v24, %v236_v22 }
  0xc0   :  { %v202_v26 = vadd.f32 %v201_v25, %v200_v23  ;;  %v239_v27 = vrot.slane %v238_v13, 1 }
  0xc2   :  { %203 = vst [vmem:[%s451_s3] sm:$0x1] %v202_v26  ;;  %v240_v19 = vadd.f32 %v239_v27, %v238_v13 }
  0xc4   :  { %241 = vst [vmem:[%s452_s4] sm:$0x1] %v240_v19 }

// kernel: _lambda_.9
= control target key start
LH: loop header
LB: loop body
LE: loop exit
PB: predicated region body
PF: predicated region fallthrough
CT: control target
= control target key end

     0   :  { %s516_s0 = inlined_call_operand.vmem [shape: bf16[128,128], index: 0, kind: input, shape index: {}]   ;;  %s517_s1 = inlined_call_operand.vmem [shape: f32[1,128], index: 1, kind: input, shape index: {}]   ;;  %s518_s2 = inlined_call_operand.vmem [shape: f32[1,128], index: 2, kind: input, shape index: {}]   ;;  %s519_s3 = inlined_call_operand.vmem [shape: bf16[128,128], index: 3, kind: input, shape index: {}]   ;;  %s520_s4 = inlined_call_operand.vmem [shape: f32[1,128], index: 4, kind: input, shape index: {}]   ;;  %s521_s5 = inlined_call_operand.vmem [shape: f32[1,128], index: 5, kind: input, shape index: {}]   ;;  %s522_s6 = inlined_call_operand.vmem [shape: f32[128,128], index: 6, kind: output, shape index: {}]  }
   0x1   :  { %v220_v0 = vld [vmem:[%s516_s0] sm:$0xff]   ;;  %v283_v12 = vld [vmem:[%s516_s0 + $0x8] sm:$0xff]   ;;  %v284_v18 = vld [vmem:[%s516_s0 + $0x10] sm:$0xff]  }
   0x2   :  { %v342_v1 = vld [vmem:[%s517_s1] ss:$0 sm:$0xff]  ;;  %v221_v2 = vunpack.c.l.bf16 %v220_v0  ;;  %v222_v5 = vunpack.c.h.bf16 %v220_v0  ;;  %v290_v13 = vld [vmem:[%s519_s3 + $0x8] sm:$0xff]   ;;  %v225_v16 = vunpack.c.l.bf16 %v283_v12  ;;  %v291_v19 = vld [vmem:[%s519_s3 + $0x10] sm:$0xff]   ;;  %v226_v22 = vunpack.c.h.bf16 %v283_v12 }
   0x3   :  { %v347_v3 = vld [vmem:[%s518_s2] ss:$0 sm:$0xff]  ;;  %v257_v17 = vunpack.c.l.bf16 %v290_v13  ;;  %v258_v23 = vunpack.c.h.bf16 %v290_v13  ;;  %v229_v30 = vunpack.c.l.bf16 %v284_v18  ;;  %v261_v31 = vunpack.c.l.bf16 %v291_v19  ;;  %v285_v40 = vld [vmem:[%s516_s0 + $0x18] sm:$0xff]   ;;  %v287_v12 = vld [vmem:[%s516_s0 + $0x28] sm:$0xff]  }
   0x4   :  { %v252_v4 = vld [vmem:[%s519_s3] sm:$0xff]   ;;  %v59_v9 = vmul.f32 %v342_v1, %v221_v2  ;;  %v60_v11 = vmul.f32 %v342_v1, %v222_v5  ;;  %v61_v26 = vmul.f32 %v342_v1, %v225_v16  ;;  %v62_v28 = vmul.f32 %v342_v1, %v226_v22  ;;  %v292_v41 = vld [vmem:[%s519_s3 + $0x18] sm:$0xff]  }
   0x5   :  { %v253_v6 = vunpack.c.l.bf16 %v252_v4  ;;  %v355_v7 = vld [vmem:[%s520_s4] ss:$0 sm:$0xff]  ;;  %v254_v8 = vunpack.c.h.bf16 %v252_v4  ;;  %v63_v38 = vmul.f32 %v342_v1, %v229_v30  ;;  %v230_v45 = vunpack.c.h.bf16 %v284_v18  ;;  %v288_v30 = vld [vmem:[%s516_s0 + $0x30] sm:$0xff]  }
   0x6   :  { %v361_v10 = vld [vmem:[%s521_s5] ss:$0 sm:$0xff]  ;;  %v79_v20 = vadd.f32 %v347_v3, %v59_v9  ;;  %v80_v21 = vadd.f32 %v347_v3, %v60_v11  ;;  %v133_v27 = vmul.f32 %v355_v7, %v257_v17  ;;  %v134_v29 = vmul.f32 %v355_v7, %v258_v23 }
   0x7   :  { %v131_v14 = vmul.f32 %v355_v7, %v253_v6  ;;  %v132_v15 = vmul.f32 %v355_v7, %v254_v8  ;;  %v81_v34 = vadd.f32 %v347_v3, %v61_v26  ;;  %v82_v36 = vadd.f32 %v347_v3, %v62_v28  ;;  %v286_v54 = vld [vmem:[%s516_s0 + $0x20] sm:$0xff]  }
   0x8   :  { %v153_v35 = vadd.f32 %v361_v10, %v133_v27  ;;  %v154_v37 = vadd.f32 %v361_v10, %v134_v29  ;;  %v135_v39 = vmul.f32 %v355_v7, %v261_v31  ;;  %v83_v47 = vadd.f32 %v347_v3, %v63_v38  ;;  %v293_v59 = vld [vmem:[%s519_s3 + $0x20] sm:$0xff]  }
   0x9   :  { %v151_v24 = vadd.f32 %v361_v10, %v131_v14  ;;  %v152_v25 = vadd.f32 %v361_v10, %v132_v15  ;;  %v262_v49 = vunpack.c.h.bf16 %v291_v19  ;;  %v64_v51 = vmul.f32 %v342_v1, %v230_v45 }
   0xa   :  { %v169_v44 = vadd.f32 %v153_v35, %v81_v34  ;;  %v170_v46 = vadd.f32 %v154_v37, %v82_v36  ;;  %v155_v48 = vadd.f32 %v361_v10, %v135_v39  ;;  %v233_v52 = vunpack.c.l.bf16 %v285_v40  ;;  %v295_v35 = vld [vmem:[%s519_s3 + $0x30] sm:$0xff]  }
   0xb   :  { %v167_v32 = vadd.f32 %v151_v24, %v79_v20  ;;  %v168_v33 = vadd.f32 %v152_v25, %v80_v21  ;;  %v265_v53 = vunpack.c.l.bf16 %v292_v41  ;;  %v136_v57 = vmul.f32 %v355_v7, %v262_v49  ;;  %v294_v21 = vld [vmem:[%s519_s3 + $0x28] sm:$0xff]  }
   0xc   :  { %v185_v50 = vmax.f32 %v169_v44, 0.0  ;;  %v186_v55 = vmax.f32 %v170_v46, 0.0  ;;  %v171_v56 = vadd.f32 %v155_v48, %v83_v47  ;;  %v234_v58 = vunpack.c.h.bf16 %v285_v40  ;;  %v289_v48 = vld [vmem:[%s516_s0 + $0x38] sm:$0xff]  }
   0xd   :  { %v183_v42 = vmax.f32 %v167_v32, 0.0  ;;  %v184_v43 = vmax.f32 %v168_v33, 0.0  ;;  %v84_v60 = vadd.f32 %v347_v3, %v64_v51  ;;  %v65_v61 = vmul.f32 %v342_v1, %v233_v52 }
   0xe   :  { %201 = vst [vmem:[%s522_s6 + $0x10] sm:$0xff] %v185_v50  ;;  %v137_v62 = vmul.f32 %v355_v7, %v265_v53  ;;  %v266_v63 = vunpack.c.h.bf16 %v292_v41  ;;  %v187_v0 = vmax.f32 %v171_v56, 0.0  ;;  %v156_v2 = vadd.f32 %v361_v10, %v136_v57  ;;  %v296_v53 = vld [vmem:[%s519_s3 + $0x38] sm:$0xff]  }
   0xf   :  { %199 = vst [vmem:[%s522_s6] sm:$0xff] %v183_v42  ;;  %v66_v4 = vmul.f32 %v342_v1, %v234_v58  ;;  %v237_v5 = vunpack.c.l.bf16 %v286_v54  ;;  %v85_v6 = vadd.f32 %v347_v3, %v65_v61  ;;  %v269_v11 = vunpack.c.l.bf16 %v293_v59 }
  0x10   :  { %200 = vst [vmem:[%s522_s6 + $0x8] sm:$0xff] %v184_v43  ;;  %v157_v8 = vadd.f32 %v361_v10, %v137_v62  ;;  %v138_v9 = vmul.f32 %v355_v7, %v266_v63  ;;  %v172_v13 = vadd.f32 %v156_v2, %v84_v60  ;;  %v238_v16 = vunpack.c.h.bf16 %v286_v54 }
  0x11   :  { %202 = vst [vmem:[%s522_s6 + $0x18] sm:$0xff] %v186_v55  ;;  %v86_v14 = vadd.f32 %v347_v3, %v66_v4  ;;  %v67_v15 = vmul.f32 %v342_v1, %v237_v5  ;;  %v139_v19 = vmul.f32 %v355_v7, %v269_v11  ;;  %v270_v20 = vunpack.c.h.bf16 %v293_v59 }
  0x12   :  { %203 = vst [vmem:[%s522_s6 + $0x20] sm:$0xff] %v187_v0  ;;  %v173_v17 = vadd.f32 %v157_v8, %v85_v6  ;;  %v158_v18 = vadd.f32 %v361_v10, %v138_v9  ;;  %v188_v22 = vmax.f32 %v172_v13, 0.0  ;;  %v68_v24 = vmul.f32 %v342_v1, %v238_v16 }
  0x13   :  { %v87_v23 = vadd.f32 %v347_v3, %v67_v15  ;;  %v241_v25 = vunpack.c.l.bf16 %v287_v12  ;;  %v159_v28 = vadd.f32 %v361_v10, %v139_v19  ;;  %v140_v29 = vmul.f32 %v355_v7, %v270_v20 }
  0x14   :  { %v189_v26 = vmax.f32 %v173_v17, 0.0  ;;  %v174_v27 = vadd.f32 %v158_v18, %v86_v14  ;;  %204 = vst [vmem:[%s522_s6 + $0x28] sm:$0xff] %v188_v22  ;;  %v88_v31 = vadd.f32 %v347_v3, %v68_v24  ;;  %v273_v33 = vunpack.c.l.bf16 %v294_v21 }
  0x15   :  { %v69_v32 = vmul.f32 %v342_v1, %v241_v25  ;;  %v242_v34 = vunpack.c.h.bf16 %v287_v12  ;;  %v175_v37 = vadd.f32 %v159_v28, %v87_v23  ;;  %v160_v38 = vadd.f32 %v361_v10, %v140_v29 }
  0x16   :  { %205 = vst [vmem:[%s522_s6 + $0x30] sm:$0xff] %v189_v26  ;;  %v190_v36 = vmax.f32 %v174_v27, 0.0  ;;  %v274_v39 = vunpack.c.h.bf16 %v294_v21  ;;  %v141_v41 = vmul.f32 %v355_v7, %v273_v33  ;;  %v245_v43 = vunpack.c.l.bf16 %v288_v30 }
  0x17   :  { %v89_v40 = vadd.f32 %v347_v3, %v69_v32  ;;  %v70_v42 = vmul.f32 %v342_v1, %v242_v34  ;;  %v191_v44 = vmax.f32 %v175_v37, 0.0  ;;  %v176_v45 = vadd.f32 %v160_v38, %v88_v31 }
  0x18   :  { %206 = vst [vmem:[%s522_s6 + $0x38] sm:$0xff] %v190_v36  ;;  %v142_v46 = vmul.f32 %v355_v7, %v274_v39  ;;  %v277_v47 = vunpack.c.l.bf16 %v295_v35  ;;  %v161_v49 = vadd.f32 %v361_v10, %v141_v41  ;;  %v71_v51 = vmul.f32 %v342_v1, %v245_v43 }
  0x19   :  { %v90_v50 = vadd.f32 %v347_v3, %v70_v42  ;;  %v246_v52 = vunpack.c.h.bf16 %v288_v30  ;;  %207 = vst [vmem:[%s522_s6 + $0x40] sm:$0xff] %v191_v44  ;;  %v192_v54 = vmax.f32 %v176_v45, 0.0  ;;  %v278_v57 = vunpack.c.h.bf16 %v295_v35 }
  0x1a   :  { %v162_v55 = vadd.f32 %v361_v10, %v142_v46  ;;  %v143_v56 = vmul.f32 %v355_v7, %v277_v47  ;;  %v177_v58 = vadd.f32 %v161_v49, %v89_v40  ;;  %v91_v59 = vadd.f32 %v347_v3, %v71_v51 }
  0x1b   :  { %v72_v60 = vmul.f32 %v342_v1, %v246_v52  ;;  %v249_v61 = vunpack.c.l.bf16 %v289_v48  ;;  %208 = vst [vmem:[%s522_s6 + $0x48] sm:$0xff] %v192_v54  ;;  %v144_v0 = vmul.f32 %v355_v7, %v278_v57  ;;  %v281_v2 = vunpack.c.l.bf16 %v296_v53 }
  0x1c   :  { %v178_v62 = vadd.f32 %v162_v55, %v90_v50  ;;  %v163_v63 = vadd.f32 %v361_v10, %v143_v56  ;;  %v193_v4 = vmax.f32 %v177_v58, 0.0  ;;  %v250_v8 = vunpack.c.h.bf16 %v289_v48 }
  0x1d   :  { %v92_v5 = vadd.f32 %v347_v3, %v72_v60  ;;  %v73_v6 = vmul.f32 %v342_v1, %v249_v61  ;;  %v164_v12 = vadd.f32 %v361_v10, %v144_v0  ;;  %v145_v13 = vmul.f32 %v355_v7, %v281_v2 }
  0x1e   :  { %v194_v9 = vmax.f32 %v178_v62, 0.0  ;;  %v179_v11 = vadd.f32 %v163_v63, %v91_v59  ;;  %209 = vst [vmem:[%s522_s6 + $0x50] sm:$0xff] %v193_v4  ;;  %v74_v15 = vmul.f32 %v342_v1, %v250_v8  ;;  %v282_v16 = vunpack.c.h.bf16 %v296_v53 }
  0x1f   :  { %v93_v14 = vadd.f32 %v347_v3, %v73_v6  ;;  %v180_v18 = vadd.f32 %v164_v12, %v92_v5  ;;  %v165_v19 = vadd.f32 %v361_v10, %v145_v13 }
  0x20   :  { %210 = vst [vmem:[%s522_s6 + $0x58] sm:$0xff] %v194_v9  ;;  %v195_v17 = vmax.f32 %v179_v11, 0.0  ;;  %v94_v20 = vadd.f32 %v347_v3, %v74_v15  ;;  %v146_v21 = vmul.f32 %v355_v7, %v282_v16 }
  0x21   :  { %v196_v22 = vmax.f32 %v180_v18, 0.0  ;;  %v181_v23 = vadd.f32 %v165_v19, %v93_v14 }
  0x22   :  { %211 = vst [vmem:[%s522_s6 + $0x60] sm:$0xff] %v195_v17  ;;  %v166_v1 = vadd.f32 %v361_v10, %v146_v21 }
  0x23   :  { %212 = vst [vmem:[%s522_s6 + $0x68] sm:$0xff] %v196_v22  ;;  %v197_v24 = vmax.f32 %v181_v23, 0.0 }
  0x24   :  { %v182_v25 = vadd.f32 %v166_v1, %v94_v20 }
  0x25   :  { %213 = vst [vmem:[%s522_s6 + $0x70] sm:$0xff] %v197_v24 }
  0x26   :  { %v198_v3 = vmax.f32 %v182_v25, 0.0 }
  0x28   :  { %214 = vst [vmem:[%s522_s6 + $0x78] sm:$0xff] %v198_v3 }

</bundles_post_ra>
